<compile_context>
chip_gen: v7x
topology: tpu7x:2x2x1
jax: 0.10.0
libtpu: 0.0.40
codegen_flags: <defaults>
</compile_context>

<pallas_src>
import jax
import jax.numpy as jnp
from jax.experimental import pallas as pl
from jax.experimental.pallas import tpu as pltpu

# ----------------------------- hyper-parameters (small test sizes) -----------------------------
T = 8            # sequence length (HyperParams.T=30; small here)
B = 8            # batch (HyperParams.batch_size=32; small here)
INPUT_DIM = 1    # HyperParams.input_dim
HIDDEN = 64      # HyperParams.hidden_dim
NUM_LAYERS = 2   # HyperParams.num_layers
FC1_DIM = 32
OUT_DIM = 2      # HyperParams.output_dim
BN_EPS = 1e-5

H4 = 4 * HIDDEN
H8 = 8 * HIDDEN


# ----------------------------- Pallas kernel -----------------------------
def simple_nn_kernel(x_ref,      # (T*B, 1)  time-major, flattened
                     wrow_ref,   # (8, 4H): r0 wih0, r1 b0, r2 b1, r3[:32] bfc1_eff, r4[:2] bfc2
                     wmat_ref,   # (H, 8H + 4H + 32): [whh0|wih1] fused | whh1 | wfc1_eff
                     wfc2_ref,   # (32, 2)
                     out_ref,    # (B, 2)
                     xg0_ref):   # VMEM scratch (T*B, 4H): layer-0 input projections
    H = HIDDEN
    H3 = 3 * H
    G4 = 4 * H
    G8 = 8 * H
    batch = out_ref.shape[0]
    t_steps = x_ref.shape[0] // batch

    def cell(g, c):
        # Gate columns laid out [i | f | o | g]; g-gate columns were pre-scaled by 2 at prep
        # time, so one full-slab sigmoid covers i/f/o and 2*sigmoid(2z)-1 recovers tanh(z).
        s = jax.nn.sigmoid(g)
        i_g = s[:, :H]
        f_g = s[:, H:2 * H]
        o_g = s[:, 2 * H:H3]
        gg = 2.0 * s[:, H3:] - 1.0
        c_new = f_g * c + i_g * gg
        h_new = o_g * jnp.tanh(c_new)
        return h_new, c_new

    # Layer-0 input projection for ALL timesteps (input_dim == 1 -> rank-1 VPU broadcast,
    # bias folded in).  Written to VMEM scratch so the (T*B,4H) slab is not live as vregs
    # across the fully-unrolled recurrence.
    xg0_ref[...] = x_ref[...] * wrow_ref[0:1, :] + wrow_ref[1:2, :]

    b1 = wrow_ref[2:3, :]          # (1, 4H) layer-1 combined bias (g-cols pre-scaled)

    z = jnp.zeros((batch, H), jnp.float32)
    h0, c0 = z, z
    h1, c1 = z, z
    rec0 = None                    # h0[t-1] @ whh0 (from previous iteration's fused matmul)
    xg1_prev = None                # h0[t-1] @ wih1 + b1

    # ---- interleaved (skewed) recurrences, fully unrolled ----
    for t in range(t_steps):
        # layer-0 cell, step t
        pre0 = xg0_ref[t * batch:(t + 1) * batch, :]
        if rec0 is not None:
            pre0 = pre0 + rec0
        h0, c0 = cell(pre0, c0)

        # fused matmul off h0[t]: cols [:4H] feed layer-0 step t+1, cols [4H:] are the
        # layer-1 input projection for step t (consumed next iteration / in the drain).
        full = jnp.dot(h0, wmat_ref[:, :G8], preferred_element_type=jnp.float32)
        rec0 = full[:, :G4]
        xg1_t = full[:, G4:] + b1

        # layer-1 cell, step t-1: depends only on previous-iteration values, so it overlaps
        # with this iteration's layer-0 chain in the schedule.
        if t >= 1:
            if t == 1:
                pre1 = xg1_prev                      # h1[-1] == 0 -> no recurrent matmul
            else:
                pre1 = xg1_prev + jnp.dot(h1, wmat_ref[:, G8:G8 + G4],
                                          preferred_element_type=jnp.float32)
            h1, c1 = cell(pre1, c1)
        xg1_prev = xg1_t

    # drain: layer-1 cell for the final step
    pre1 = xg1_prev + jnp.dot(h1, wmat_ref[:, G8:G8 + G4],
                              preferred_element_type=jnp.float32)
    h1, c1 = cell(pre1, c1)

    # fc1 (eval-BN folded) -> ReLU -> (dropout = identity) -> fc2
    wfc1_eff = wmat_ref[:, G8 + G4:G8 + G4 + FC1_DIM]
    y = jnp.dot(h1, wfc1_eff, preferred_element_type=jnp.float32) + wrow_ref[3:4, 0:FC1_DIM]
    y = jnp.maximum(y, 0.0)
    out_ref[...] = (jnp.dot(y, wfc2_ref[...], preferred_element_type=jnp.float32)
                    + wrow_ref[4:5, 0:OUT_DIM])


def simple_nn_forward(x, params):
    """x: (B, T, INPUT_DIM) float32  ->  (B, OUT_DIM) float32"""
    b, t, d_in = x.shape
    assert d_in == INPUT_DIM == 1
    # (B, T, 1) -> time-major (T*B, 1); no feature padding.
    x_flat = jnp.transpose(x, (1, 0, 2)).reshape(t * b, 1)

    args = (x_flat, params["wrow"], params["wmat"], params["wfc2"])
    vmem = pltpu.MemorySpace.VMEM
    # Gridless: total resident footprint is ~0.3 MB -> trivially fits VMEM on v5e/v6e/v7x.
    # TODO(synk): for production B=32 on v7x, add a leading 2-way batch grid with
    # dimension_semantics=("parallel",) to use the second TensorCore.
    return pl.pallas_call(
        simple_nn_kernel,
        out_shape=jax.ShapeDtypeStruct((b, OUT_DIM), jnp.float32),
        in_specs=[pl.BlockSpec(memory_space=vmem)] * len(args),
        out_specs=pl.BlockSpec(memory_space=vmem),
        scratch_shapes=[pltpu.VMEM((t * b, H4), jnp.float32)],
    )(*args)


# ----------------------------- deterministic parameter init -----------------------------
def init_params(key):
    ks = jax.random.split(key, 10)
    lstm_bound = 1.0 / jnp.sqrt(HIDDEN)   # PyTorch LSTM default: U(-1/sqrt(H), 1/sqrt(H))

    def u(k, shape):
        return jax.random.uniform(k, shape, jnp.float32, -lstm_bound, lstm_bound)

    # LSTM weights stored pre-transposed, gate columns in [i|f|o|g] order.
    # (A PyTorch [i|f|g|o] checkpoint must have its last two 64-column gate blocks swapped
    #  before packing; with random init from the same distribution the forward semantics
    #  are identical.)
    wih0 = u(ks[0], (INPUT_DIM, H4))                         # (1, 4H)
    whh0 = u(ks[1], (HIDDEN, H4))
    b0 = u(ks[2], (1, H4)) + u(ks[3], (1, H4))               # b_ih + b_hh
    wih1 = u(ks[4], (HIDDEN, H4))
    whh1 = u(ks[5], (HIDDEN, H4))
    b1 = u(ks[6], (1, H4)) + u(ks[7], (1, H4))

    # Linear layers: kaiming_normal_(mode='fan_out', nonlinearity='relu'), bias = 0
    wfc1 = jax.random.normal(ks[8], (HIDDEN, FC1_DIM), jnp.float32) * jnp.sqrt(2.0 / FC1_DIM)
    bfc1 = jnp.zeros((1, FC1_DIM), jnp.float32)
    wfc2 = jax.random.normal(ks[9], (FC1_DIM, OUT_DIM), jnp.float32) * jnp.sqrt(2.0 / OUT_DIM)
    bfc2 = jnp.zeros((1, OUT_DIM), jnp.float32)

    # BatchNorm1d(32) eval-mode: gamma=1, beta=0, running_mean=0, running_var=1 -> fold into fc1
    gamma = jnp.ones((1, FC1_DIM), jnp.float32)
    beta = jnp.zeros((1, FC1_DIM), jnp.float32)
    running_mean = jnp.zeros((1, FC1_DIM), jnp.float32)
    running_var = jnp.ones((1, FC1_DIM), jnp.float32)
    bn_scale = gamma / jnp.sqrt(running_var + BN_EPS)
    bn_bias = beta - running_mean * bn_scale
    wfc1_eff = wfc1 * bn_scale
    bfc1_eff = bfc1 * bn_scale + bn_bias

    # ---- kernel-packed parameters ----
    # Scale the g-gate columns by 2 so the kernel can use tanh(z) = 2*sigmoid(2z) - 1
    # with a single full-width sigmoid per cell.
    gscale = jnp.concatenate([jnp.ones((3 * HIDDEN,), jnp.float32),
                              2.0 * jnp.ones((HIDDEN,), jnp.float32)])[None, :]   # (1, 4H)
    wih0_k, whh0_k, b0_k = wih0 * gscale, whh0 * gscale, b0 * gscale
    wih1_k, whh1_k, b1_k = wih1 * gscale, whh1 * gscale, b1 * gscale

    # Fused recurrent RHS: one (H, 8H) matmul per step yields [h@whh0 | h@wih1].
    wfused = jnp.concatenate([whh0_k, wih1_k], axis=1)                 # (H, 8H)
    wmat = jnp.concatenate([wfused, whh1_k, wfc1_eff], axis=1)         # (H, 8H+4H+32)

    wrow = jnp.zeros((8, H4), jnp.float32)
    wrow = wrow.at[0, :].set(wih0_k[0])
    wrow = wrow.at[1, :].set(b0_k[0])
    wrow = wrow.at[2, :].set(b1_k[0])
    wrow = wrow.at[3, :FC1_DIM].set(bfc1_eff[0])
    wrow = wrow.at[4, :OUT_DIM].set(bfc2[0])

    return dict(
        # raw parameters (used only by the pure-JAX reference)
        wih0=wih0, whh0=whh0, b0=b0, wih1=wih1, whh1=whh1, b1=b1,
        wfc1=wfc1, bfc1=bfc1, bn_scale=bn_scale, bn_bias=bn_bias,
        wfc2=wfc2, bfc2=bfc2,
        # packed parameters (consumed by the kernel)
        wrow=wrow, wmat=wmat,
    )


# ----------------------------- pure-JAX reference (for correctness check) -----------------------------
def reference_forward(x, p):
    H = HIDDEN

    def cell(x_in, h, c, wih, whh, b):
        g = x_in @ wih + h @ whh + b
        i = jax.nn.sigmoid(g[:, :H])
        f = jax.nn.sigmoid(g[:, H:2 * H])
        o = jax.nn.sigmoid(g[:, 2 * H:3 * H])
        gg = jnp.tanh(g[:, 3 * H:])
        c = f * c + i * gg
        h = o * jnp.tanh(c)
        return h, c

    b = x.shape[0]
    h0 = c0 = h1 = c1 = jnp.zeros((b, H), jnp.float32)
    for t in range(x.shape[1]):
        h0, c0 = cell(x[:, t, :], h0, c0, p["wih0"], p["whh0"], p["b0"])
        h1, c1 = cell(h0, h1, c1, p["wih1"], p["whh1"], p["b1"])
    y = h1 @ p["wfc1"] + p["bfc1"]
    y = y * p["bn_scale"] + p["bn_bias"]       # un-folded BN: also validates the folding
    y = jnp.maximum(y, 0.0)
    return y @ p["wfc2"] + p["bfc2"]


if __name__ == "__main__":
    key = jax.random.PRNGKey(0)
    k_param, k_x = jax.random.split(key)
    params = init_params(k_param)
    x = jax.random.normal(k_x, (B, T, INPUT_DIM), jnp.float32)

    out = simple_nn_forward(x, params)
    out = jax.block_until_ready(out)

    ref = reference_forward(x, params)
    assert out.shape == (B, OUT_DIM)
    assert jnp.allclose(out, ref, rtol=1e-3, atol=1e-3), "mismatch vs JAX reference"

    print("KERNEL_OK")
</pallas_src>

<mosaic_0001>
module attributes {stable_mosaic.version = 11 : i64} {
  func.func @simple_nn_kernel(%arg0: memref<64x1xf32, #tpu.memory_space<vmem>>, %arg1: memref<8x256xf32, #tpu.memory_space<vmem>>, %arg2: memref<64x800xf32, #tpu.memory_space<vmem>>, %arg3: memref<32x2xf32, #tpu.memory_space<vmem>>, %arg4: memref<8x2xf32, #tpu.memory_space<vmem>>, %arg5: memref<64x256xf32, #tpu.memory_space<vmem>>) attributes {dimension_semantics = [], scalar_prefetch = 0 : i64, scratch_operands = 1 : i64, tpu.core_type = #tpu.core_type<tc>} {
    %c0 = arith.constant 0 : index
    %c0_0 = arith.constant 0 : index
    %0 = vector.load %arg0[%c0, %c0_0] : memref<64x1xf32, #tpu.memory_space<vmem>>, vector<64x1xf32>
    %c0_1 = arith.constant 0 : index
    %c0_2 = arith.constant 0 : index
    %1 = vector.load %arg1[%c0_1, %c0_2] : memref<8x256xf32, #tpu.memory_space<vmem>>, vector<1x256xf32>
    %2 = vector.broadcast %0 : vector<64x1xf32> to vector<64x256xf32>
    %3 = vector.broadcast %1 : vector<1x256xf32> to vector<64x256xf32>
    %4 = arith.mulf %2, %3 : vector<64x256xf32>
    %c1 = arith.constant 1 : index
    %c0_3 = arith.constant 0 : index
    %5 = vector.load %arg1[%c1, %c0_3] : memref<8x256xf32, #tpu.memory_space<vmem>>, vector<1x256xf32>
    %6 = vector.broadcast %5 : vector<1x256xf32> to vector<64x256xf32>
    %7 = arith.addf %4, %6 : vector<64x256xf32>
    %c0_4 = arith.constant 0 : index
    %c0_5 = arith.constant 0 : index
    %8 = vector.load %arg5[%c0_4, %c0_5] : memref<64x256xf32, #tpu.memory_space<vmem>>, vector<64x256xf32>
    tpu.vector_store %arg5[%c0_4, %c0_5], %7 {strides = array<i32>} : memref<64x256xf32, #tpu.memory_space<vmem>>, vector<64x256xf32>,
    %c2 = arith.constant 2 : index
    %c0_6 = arith.constant 0 : index
    %9 = vector.load %arg1[%c2, %c0_6] : memref<8x256xf32, #tpu.memory_space<vmem>>, vector<1x256xf32>
    %cst = arith.constant 0.000000e+00 : f32
    %10 = vector.broadcast %cst : f32 to vector<8x64xf32>
    %c0_7 = arith.constant 0 : index
    %c0_8 = arith.constant 0 : index
    %11 = vector.load %arg5[%c0_7, %c0_8] : memref<64x256xf32, #tpu.memory_space<vmem>>, vector<8x256xf32>
    %12 = arith.negf %11 : vector<8x256xf32>
    %13 = math.exp %12 : vector<8x256xf32>
    %cst_9 = arith.constant 1.000000e+00 : f32
    %14 = vector.broadcast %cst_9 : f32 to vector<8x256xf32>
    %15 = arith.addf %14, %13 : vector<8x256xf32>
    %16 = arith.divf %14, %15 : vector<8x256xf32>
    %17 = vector.extract_strided_slice %16 {offsets = [0, 0], sizes = [8, 64], strides = [1, 1]} : vector<8x256xf32> to vector<8x64xf32>
    %18 = vector.extract_strided_slice %16 {offsets = [0, 64], sizes = [8, 64], strides = [1, 1]} : vector<8x256xf32> to vector<8x64xf32>
    %19 = vector.extract_strided_slice %16 {offsets = [0, 128], sizes = [8, 64], strides = [1, 1]} : vector<8x256xf32> to vector<8x64xf32>
    %20 = vector.extract_strided_slice %16 {offsets = [0, 192], sizes = [8, 64], strides = [1, 1]} : vector<8x256xf32> to vector<8x64xf32>
    %cst_10 = arith.constant 2.000000e+00 : f32
    %21 = vector.broadcast %cst_10 : f32 to vector<8x64xf32>
    %22 = arith.mulf %21, %20 : vector<8x64xf32>
    %cst_11 = arith.constant 1.000000e+00 : f32
    %23 = vector.broadcast %cst_11 : f32 to vector<8x64xf32>
    %24 = arith.subf %22, %23 : vector<8x64xf32>
    %25 = arith.mulf %18, %10 : vector<8x64xf32>
    %26 = arith.mulf %17, %24 : vector<8x64xf32>
    %27 = arith.addf %25, %26 : vector<8x64xf32>
    %28 = math.tanh %27 : vector<8x64xf32>
    %29 = arith.mulf %19, %28 : vector<8x64xf32>
    %c0_12 = arith.constant 0 : index
    %c0_13 = arith.constant 0 : index
    %30 = vector.load %arg2[%c0_12, %c0_13] : memref<64x800xf32, #tpu.memory_space<vmem>>, vector<64x512xf32>
    %cst_14 = arith.constant dense<0.000000e+00> : vector<8x512xf32>
    %31 = tpu.matmul %29, %30, %cst_14 {dimension_numbers = #tpu.dot_dimension_numbers<[1], [0], [0], [1], [0, 0, 1, 1], [], []>} : vector<8x64xf32>, vector<64x512xf32>, vector<8x512xf32> -> vector<8x512xf32>
    %32 = vector.extract_strided_slice %31 {offsets = [0, 0], sizes = [8, 256], strides = [1, 1]} : vector<8x512xf32> to vector<8x256xf32>
    %33 = vector.extract_strided_slice %31 {offsets = [0, 256], sizes = [8, 256], strides = [1, 1]} : vector<8x512xf32> to vector<8x256xf32>
    %34 = vector.broadcast %9 : vector<1x256xf32> to vector<8x256xf32>
    %35 = arith.addf %33, %34 : vector<8x256xf32>
    %c8 = arith.constant 8 : index
    %c0_15 = arith.constant 0 : index
    %36 = vector.load %arg5[%c8, %c0_15] : memref<64x256xf32, #tpu.memory_space<vmem>>, vector<8x256xf32>
    %37 = arith.addf %36, %32 : vector<8x256xf32>
    %38 = arith.negf %37 : vector<8x256xf32>
    %39 = math.exp %38 : vector<8x256xf32>
    %cst_16 = arith.constant 1.000000e+00 : f32
    %40 = vector.broadcast %cst_16 : f32 to vector<8x256xf32>
    %41 = arith.addf %40, %39 : vector<8x256xf32>
    %42 = arith.divf %40, %41 : vector<8x256xf32>
    %43 = vector.extract_strided_slice %42 {offsets = [0, 0], sizes = [8, 64], strides = [1, 1]} : vector<8x256xf32> to vector<8x64xf32>
    %44 = vector.extract_strided_slice %42 {offsets = [0, 64], sizes = [8, 64], strides = [1, 1]} : vector<8x256xf32> to vector<8x64xf32>
    %45 = vector.extract_strided_slice %42 {offsets = [0, 128], sizes = [8, 64], strides = [1, 1]} : vector<8x256xf32> to vector<8x64xf32>
    %46 = vector.extract_strided_slice %42 {offsets = [0, 192], sizes = [8, 64], strides = [1, 1]} : vector<8x256xf32> to vector<8x64xf32>
    %cst_17 = arith.constant 2.000000e+00 : f32
    %47 = vector.broadcast %cst_17 : f32 to vector<8x64xf32>
    %48 = arith.mulf %47, %46 : vector<8x64xf32>
    %cst_18 = arith.constant 1.000000e+00 : f32
    %49 = vector.broadcast %cst_18 : f32 to vector<8x64xf32>
    %50 = arith.subf %48, %49 : vector<8x64xf32>
    %51 = arith.mulf %44, %27 : vector<8x64xf32>
    %52 = arith.mulf %43, %50 : vector<8x64xf32>
    %53 = arith.addf %51, %52 : vector<8x64xf32>
    %54 = math.tanh %53 : vector<8x64xf32>
    %55 = arith.mulf %45, %54 : vector<8x64xf32>
    %c0_19 = arith.constant 0 : index
    %c0_20 = arith.constant 0 : index
    %56 = vector.load %arg2[%c0_19, %c0_20] : memref<64x800xf32, #tpu.memory_space<vmem>>, vector<64x512xf32>
    %cst_21 = arith.constant dense<0.000000e+00> : vector<8x512xf32>
    %57 = tpu.matmul %55, %56, %cst_21 {dimension_numbers = #tpu.dot_dimension_numbers<[1], [0], [0], [1], [0, 0, 1, 1], [], []>} : vector<8x64xf32>, vector<64x512xf32>, vector<8x512xf32> -> vector<8x512xf32>
    %58 = vector.extract_strided_slice %57 {offsets = [0, 0], sizes = [8, 256], strides = [1, 1]} : vector<8x512xf32> to vector<8x256xf32>
    %59 = vector.extract_strided_slice %57 {offsets = [0, 256], sizes = [8, 256], strides = [1, 1]} : vector<8x512xf32> to vector<8x256xf32>
    %60 = vector.broadcast %9 : vector<1x256xf32> to vector<8x256xf32>
    %61 = arith.addf %59, %60 : vector<8x256xf32>
    %62 = arith.negf %35 : vector<8x256xf32>
    %63 = math.exp %62 : vector<8x256xf32>
    %cst_22 = arith.constant 1.000000e+00 : f32
    %64 = vector.broadcast %cst_22 : f32 to vector<8x256xf32>
    %65 = arith.addf %64, %63 : vector<8x256xf32>
    %66 = arith.divf %64, %65 : vector<8x256xf32>
    %67 = vector.extract_strided_slice %66 {offsets = [0, 0], sizes = [8, 64], strides = [1, 1]} : vector<8x256xf32> to vector<8x64xf32>
    %68 = vector.extract_strided_slice %66 {offsets = [0, 64], sizes = [8, 64], strides = [1, 1]} : vector<8x256xf32> to vector<8x64xf32>
    %69 = vector.extract_strided_slice %66 {offsets = [0, 128], sizes = [8, 64], strides = [1, 1]} : vector<8x256xf32> to vector<8x64xf32>
    %70 = vector.extract_strided_slice %66 {offsets = [0, 192], sizes = [8, 64], strides = [1, 1]} : vector<8x256xf32> to vector<8x64xf32>
    %cst_23 = arith.constant 2.000000e+00 : f32
    %71 = vector.broadcast %cst_23 : f32 to vector<8x64xf32>
    %72 = arith.mulf %71, %70 : vector<8x64xf32>
    %cst_24 = arith.constant 1.000000e+00 : f32
    %73 = vector.broadcast %cst_24 : f32 to vector<8x64xf32>
    %74 = arith.subf %72, %73 : vector<8x64xf32>
    %75 = arith.mulf %68, %10 : vector<8x64xf32>
    %76 = arith.mulf %67, %74 : vector<8x64xf32>
    %77 = arith.addf %75, %76 : vector<8x64xf32>
    %78 = math.tanh %77 : vector<8x64xf32>
    %79 = arith.mulf %69, %78 : vector<8x64xf32>
    %c16 = arith.constant 16 : index
    %c0_25 = arith.constant 0 : index
    %80 = vector.load %arg5[%c16, %c0_25] : memref<64x256xf32, #tpu.memory_space<vmem>>, vector<8x256xf32>
    %81 = arith.addf %80, %58 : vector<8x256xf32>
    %82 = arith.negf %81 : vector<8x256xf32>
    %83 = math.exp %82 : vector<8x256xf32>
    %cst_26 = arith.constant 1.000000e+00 : f32
    %84 = vector.broadcast %cst_26 : f32 to vector<8x256xf32>
    %85 = arith.addf %84, %83 : vector<8x256xf32>
    %86 = arith.divf %84, %85 : vector<8x256xf32>
    %87 = vector.extract_strided_slice %86 {offsets = [0, 0], sizes = [8, 64], strides = [1, 1]} : vector<8x256xf32> to vector<8x64xf32>
    %88 = vector.extract_strided_slice %86 {offsets = [0, 64], sizes = [8, 64], strides = [1, 1]} : vector<8x256xf32> to vector<8x64xf32>
    %89 = vector.extract_strided_slice %86 {offsets = [0, 128], sizes = [8, 64], strides = [1, 1]} : vector<8x256xf32> to vector<8x64xf32>
    %90 = vector.extract_strided_slice %86 {offsets = [0, 192], sizes = [8, 64], strides = [1, 1]} : vector<8x256xf32> to vector<8x64xf32>
    %cst_27 = arith.constant 2.000000e+00 : f32
    %91 = vector.broadcast %cst_27 : f32 to vector<8x64xf32>
    %92 = arith.mulf %91, %90 : vector<8x64xf32>
    %cst_28 = arith.constant 1.000000e+00 : f32
    %93 = vector.broadcast %cst_28 : f32 to vector<8x64xf32>
    %94 = arith.subf %92, %93 : vector<8x64xf32>
    %95 = arith.mulf %88, %53 : vector<8x64xf32>
    %96 = arith.mulf %87, %94 : vector<8x64xf32>
    %97 = arith.addf %95, %96 : vector<8x64xf32>
    %98 = math.tanh %97 : vector<8x64xf32>
    %99 = arith.mulf %89, %98 : vector<8x64xf32>
    %c0_29 = arith.constant 0 : index
    %c0_30 = arith.constant 0 : index
    %100 = vector.load %arg2[%c0_29, %c0_30] : memref<64x800xf32, #tpu.memory_space<vmem>>, vector<64x512xf32>
    %cst_31 = arith.constant dense<0.000000e+00> : vector<8x512xf32>
    %101 = tpu.matmul %99, %100, %cst_31 {dimension_numbers = #tpu.dot_dimension_numbers<[1], [0], [0], [1], [0, 0, 1, 1], [], []>} : vector<8x64xf32>, vector<64x512xf32>, vector<8x512xf32> -> vector<8x512xf32>
    %102 = vector.extract_strided_slice %101 {offsets = [0, 0], sizes = [8, 256], strides = [1, 1]} : vector<8x512xf32> to vector<8x256xf32>
    %103 = vector.extract_strided_slice %101 {offsets = [0, 256], sizes = [8, 256], strides = [1, 1]} : vector<8x512xf32> to vector<8x256xf32>
    %104 = vector.broadcast %9 : vector<1x256xf32> to vector<8x256xf32>
    %105 = arith.addf %103, %104 : vector<8x256xf32>
    %c0_32 = arith.constant 0 : index
    %c512 = arith.constant 512 : index
    %106 = vector.load %arg2[%c0_32, %c512] : memref<64x800xf32, #tpu.memory_space<vmem>>, vector<64x256xf32>
    %cst_33 = arith.constant dense<0.000000e+00> : vector<8x256xf32>
    %107 = tpu.matmul %79, %106, %cst_33 {dimension_numbers = #tpu.dot_dimension_numbers<[1], [0], [0], [1], [0, 0, 1, 1], [], []>} : vector<8x64xf32>, vector<64x256xf32>, vector<8x256xf32> -> vector<8x256xf32>
    %108 = arith.addf %61, %107 : vector<8x256xf32>
    %109 = arith.negf %108 : vector<8x256xf32>
    %110 = math.exp %109 : vector<8x256xf32>
    %cst_34 = arith.constant 1.000000e+00 : f32
    %111 = vector.broadcast %cst_34 : f32 to vector<8x256xf32>
    %112 = arith.addf %111, %110 : vector<8x256xf32>
    %113 = arith.divf %111, %112 : vector<8x256xf32>
    %114 = vector.extract_strided_slice %113 {offsets = [0, 0], sizes = [8, 64], strides = [1, 1]} : vector<8x256xf32> to vector<8x64xf32>
    %115 = vector.extract_strided_slice %113 {offsets = [0, 64], sizes = [8, 64], strides = [1, 1]} : vector<8x256xf32> to vector<8x64xf32>
    %116 = vector.extract_strided_slice %113 {offsets = [0, 128], sizes = [8, 64], strides = [1, 1]} : vector<8x256xf32> to vector<8x64xf32>
    %117 = vector.extract_strided_slice %113 {offsets = [0, 192], sizes = [8, 64], strides = [1, 1]} : vector<8x256xf32> to vector<8x64xf32>
    %cst_35 = arith.constant 2.000000e+00 : f32
    %118 = vector.broadcast %cst_35 : f32 to vector<8x64xf32>
    %119 = arith.mulf %118, %117 : vector<8x64xf32>
    %cst_36 = arith.constant 1.000000e+00 : f32
    %120 = vector.broadcast %cst_36 : f32 to vector<8x64xf32>
    %121 = arith.subf %119, %120 : vector<8x64xf32>
    %122 = arith.mulf %115, %77 : vector<8x64xf32>
    %123 = arith.mulf %114, %121 : vector<8x64xf32>
    %124 = arith.addf %122, %123 : vector<8x64xf32>
    %125 = math.tanh %124 : vector<8x64xf32>
    %126 = arith.mulf %116, %125 : vector<8x64xf32>
    %c24 = arith.constant 24 : index
    %c0_37 = arith.constant 0 : index
    %127 = vector.load %arg5[%c24, %c0_37] : memref<64x256xf32, #tpu.memory_space<vmem>>, vector<8x256xf32>
    %128 = arith.addf %127, %102 : vector<8x256xf32>
    %129 = arith.negf %128 : vector<8x256xf32>
    %130 = math.exp %129 : vector<8x256xf32>
    %cst_38 = arith.constant 1.000000e+00 : f32
    %131 = vector.broadcast %cst_38 : f32 to vector<8x256xf32>
    %132 = arith.addf %131, %130 : vector<8x256xf32>
    %133 = arith.divf %131, %132 : vector<8x256xf32>
    %134 = vector.extract_strided_slice %133 {offsets = [0, 0], sizes = [8, 64], strides = [1, 1]} : vector<8x256xf32> to vector<8x64xf32>
    %135 = vector.extract_strided_slice %133 {offsets = [0, 64], sizes = [8, 64], strides = [1, 1]} : vector<8x256xf32> to vector<8x64xf32>
    %136 = vector.extract_strided_slice %133 {offsets = [0, 128], sizes = [8, 64], strides = [1, 1]} : vector<8x256xf32> to vector<8x64xf32>
    %137 = vector.extract_strided_slice %133 {offsets = [0, 192], sizes = [8, 64], strides = [1, 1]} : vector<8x256xf32> to vector<8x64xf32>
    %cst_39 = arith.constant 2.000000e+00 : f32
    %138 = vector.broadcast %cst_39 : f32 to vector<8x64xf32>
    %139 = arith.mulf %138, %137 : vector<8x64xf32>
    %cst_40 = arith.constant 1.000000e+00 : f32
    %140 = vector.broadcast %cst_40 : f32 to vector<8x64xf32>
    %141 = arith.subf %139, %140 : vector<8x64xf32>
    %142 = arith.mulf %135, %97 : vector<8x64xf32>
    %143 = arith.mulf %134, %141 : vector<8x64xf32>
    %144 = arith.addf %142, %143 : vector<8x64xf32>
    %145 = math.tanh %144 : vector<8x64xf32>
    %146 = arith.mulf %136, %145 : vector<8x64xf32>
    %c0_41 = arith.constant 0 : index
    %c0_42 = arith.constant 0 : index
    %147 = vector.load %arg2[%c0_41, %c0_42] : memref<64x800xf32, #tpu.memory_space<vmem>>, vector<64x512xf32>
    %cst_43 = arith.constant dense<0.000000e+00> : vector<8x512xf32>
    %148 = tpu.matmul %146, %147, %cst_43 {dimension_numbers = #tpu.dot_dimension_numbers<[1], [0], [0], [1], [0, 0, 1, 1], [], []>} : vector<8x64xf32>, vector<64x512xf32>, vector<8x512xf32> -> vector<8x512xf32>
    %149 = vector.extract_strided_slice %148 {offsets = [0, 0], sizes = [8, 256], strides = [1, 1]} : vector<8x512xf32> to vector<8x256xf32>
    %150 = vector.extract_strided_slice %148 {offsets = [0, 256], sizes = [8, 256], strides = [1, 1]} : vector<8x512xf32> to vector<8x256xf32>
    %151 = vector.broadcast %9 : vector<1x256xf32> to vector<8x256xf32>
    %152 = arith.addf %150, %151 : vector<8x256xf32>
    %c0_44 = arith.constant 0 : index
    %c512_45 = arith.constant 512 : index
    %153 = vector.load %arg2[%c0_44, %c512_45] : memref<64x800xf32, #tpu.memory_space<vmem>>, vector<64x256xf32>
    %cst_46 = arith.constant dense<0.000000e+00> : vector<8x256xf32>
    %154 = tpu.matmul %126, %153, %cst_46 {dimension_numbers = #tpu.dot_dimension_numbers<[1], [0], [0], [1], [0, 0, 1, 1], [], []>} : vector<8x64xf32>, vector<64x256xf32>, vector<8x256xf32> -> vector<8x256xf32>
    %155 = arith.addf %105, %154 : vector<8x256xf32>
    %156 = arith.negf %155 : vector<8x256xf32>
    %157 = math.exp %156 : vector<8x256xf32>
    %cst_47 = arith.constant 1.000000e+00 : f32
    %158 = vector.broadcast %cst_47 : f32 to vector<8x256xf32>
    %159 = arith.addf %158, %157 : vector<8x256xf32>
    %160 = arith.divf %158, %159 : vector<8x256xf32>
    %161 = vector.extract_strided_slice %160 {offsets = [0, 0], sizes = [8, 64], strides = [1, 1]} : vector<8x256xf32> to vector<8x64xf32>
    %162 = vector.extract_strided_slice %160 {offsets = [0, 64], sizes = [8, 64], strides = [1, 1]} : vector<8x256xf32> to vector<8x64xf32>
    %163 = vector.extract_strided_slice %160 {offsets = [0, 128], sizes = [8, 64], strides = [1, 1]} : vector<8x256xf32> to vector<8x64xf32>
    %164 = vector.extract_strided_slice %160 {offsets = [0, 192], sizes = [8, 64], strides = [1, 1]} : vector<8x256xf32> to vector<8x64xf32>
    %cst_48 = arith.constant 2.000000e+00 : f32
    %165 = vector.broadcast %cst_48 : f32 to vector<8x64xf32>
    %166 = arith.mulf %165, %164 : vector<8x64xf32>
    %cst_49 = arith.constant 1.000000e+00 : f32
    %167 = vector.broadcast %cst_49 : f32 to vector<8x64xf32>
    %168 = arith.subf %166, %167 : vector<8x64xf32>
    %169 = arith.mulf %162, %124 : vector<8x64xf32>
    %170 = arith.mulf %161, %168 : vector<8x64xf32>
    %171 = arith.addf %169, %170 : vector<8x64xf32>
    %172 = math.tanh %171 : vector<8x64xf32>
    %173 = arith.mulf %163, %172 : vector<8x64xf32>
    %c32 = arith.constant 32 : index
    %c0_50 = arith.constant 0 : index
    %174 = vector.load %arg5[%c32, %c0_50] : memref<64x256xf32, #tpu.memory_space<vmem>>, vector<8x256xf32>
    %175 = arith.addf %174, %149 : vector<8x256xf32>
    %176 = arith.negf %175 : vector<8x256xf32>
    %177 = math.exp %176 : vector<8x256xf32>
    %cst_51 = arith.constant 1.000000e+00 : f32
    %178 = vector.broadcast %cst_51 : f32 to vector<8x256xf32>
    %179 = arith.addf %178, %177 : vector<8x256xf32>
    %180 = arith.divf %178, %179 : vector<8x256xf32>
    %181 = vector.extract_strided_slice %180 {offsets = [0, 0], sizes = [8, 64], strides = [1, 1]} : vector<8x256xf32> to vector<8x64xf32>
    %182 = vector.extract_strided_slice %180 {offsets = [0, 64], sizes = [8, 64], strides = [1, 1]} : vector<8x256xf32> to vector<8x64xf32>
    %183 = vector.extract_strided_slice %180 {offsets = [0, 128], sizes = [8, 64], strides = [1, 1]} : vector<8x256xf32> to vector<8x64xf32>
    %184 = vector.extract_strided_slice %180 {offsets = [0, 192], sizes = [8, 64], strides = [1, 1]} : vector<8x256xf32> to vector<8x64xf32>
    %cst_52 = arith.constant 2.000000e+00 : f32
    %185 = vector.broadcast %cst_52 : f32 to vector<8x64xf32>
    %186 = arith.mulf %185, %184 : vector<8x64xf32>
    %cst_53 = arith.constant 1.000000e+00 : f32
    %187 = vector.broadcast %cst_53 : f32 to vector<8x64xf32>
    %188 = arith.subf %186, %187 : vector<8x64xf32>
    %189 = arith.mulf %182, %144 : vector<8x64xf32>
    %190 = arith.mulf %181, %188 : vector<8x64xf32>
    %191 = arith.addf %189, %190 : vector<8x64xf32>
    %192 = math.tanh %191 : vector<8x64xf32>
    %193 = arith.mulf %183, %192 : vector<8x64xf32>
    %c0_54 = arith.constant 0 : index
    %c0_55 = arith.constant 0 : index
    %194 = vector.load %arg2[%c0_54, %c0_55] : memref<64x800xf32, #tpu.memory_space<vmem>>, vector<64x512xf32>
    %cst_56 = arith.constant dense<0.000000e+00> : vector<8x512xf32>
    %195 = tpu.matmul %193, %194, %cst_56 {dimension_numbers = #tpu.dot_dimension_numbers<[1], [0], [0], [1], [0, 0, 1, 1], [], []>} : vector<8x64xf32>, vector<64x512xf32>, vector<8x512xf32> -> vector<8x512xf32>
    %196 = vector.extract_strided_slice %195 {offsets = [0, 0], sizes = [8, 256], strides = [1, 1]} : vector<8x512xf32> to vector<8x256xf32>
    %197 = vector.extract_strided_slice %195 {offsets = [0, 256], sizes = [8, 256], strides = [1, 1]} : vector<8x512xf32> to vector<8x256xf32>
    %198 = vector.broadcast %9 : vector<1x256xf32> to vector<8x256xf32>
    %199 = arith.addf %197, %198 : vector<8x256xf32>
    %c0_57 = arith.constant 0 : index
    %c512_58 = arith.constant 512 : index
    %200 = vector.load %arg2[%c0_57, %c512_58] : memref<64x800xf32, #tpu.memory_space<vmem>>, vector<64x256xf32>
    %cst_59 = arith.constant dense<0.000000e+00> : vector<8x256xf32>
    %201 = tpu.matmul %173, %200, %cst_59 {dimension_numbers = #tpu.dot_dimension_numbers<[1], [0], [0], [1], [0, 0, 1, 1], [], []>} : vector<8x64xf32>, vector<64x256xf32>, vector<8x256xf32> -> vector<8x256xf32>
    %202 = arith.addf %152, %201 : vector<8x256xf32>
    %203 = arith.negf %202 : vector<8x256xf32>
    %204 = math.exp %203 : vector<8x256xf32>
    %cst_60 = arith.constant 1.000000e+00 : f32
    %205 = vector.broadcast %cst_60 : f32 to vector<8x256xf32>
    %206 = arith.addf %205, %204 : vector<8x256xf32>
    %207 = arith.divf %205, %206 : vector<8x256xf32>
    %208 = vector.extract_strided_slice %207 {offsets = [0, 0], sizes = [8, 64], strides = [1, 1]} : vector<8x256xf32> to vector<8x64xf32>
    %209 = vector.extract_strided_slice %207 {offsets = [0, 64], sizes = [8, 64], strides = [1, 1]} : vector<8x256xf32> to vector<8x64xf32>
    %210 = vector.extract_strided_slice %207 {offsets = [0, 128], sizes = [8, 64], strides = [1, 1]} : vector<8x256xf32> to vector<8x64xf32>
    %211 = vector.extract_strided_slice %207 {offsets = [0, 192], sizes = [8, 64], strides = [1, 1]} : vector<8x256xf32> to vector<8x64xf32>
    %cst_61 = arith.constant 2.000000e+00 : f32
    %212 = vector.broadcast %cst_61 : f32 to vector<8x64xf32>
    %213 = arith.mulf %212, %211 : vector<8x64xf32>
    %cst_62 = arith.constant 1.000000e+00 : f32
    %214 = vector.broadcast %cst_62 : f32 to vector<8x64xf32>
    %215 = arith.subf %213, %214 : vector<8x64xf32>
    %216 = arith.mulf %209, %171 : vector<8x64xf32>
    %217 = arith.mulf %208, %215 : vector<8x64xf32>
    %218 = arith.addf %216, %217 : vector<8x64xf32>
    %219 = math.tanh %218 : vector<8x64xf32>
    %220 = arith.mulf %210, %219 : vector<8x64xf32>
    %c40 = arith.constant 40 : index
    %c0_63 = arith.constant 0 : index
    %221 = vector.load %arg5[%c40, %c0_63] : memref<64x256xf32, #tpu.memory_space<vmem>>, vector<8x256xf32>
    %222 = arith.addf %221, %196 : vector<8x256xf32>
    %223 = arith.negf %222 : vector<8x256xf32>
    %224 = math.exp %223 : vector<8x256xf32>
    %cst_64 = arith.constant 1.000000e+00 : f32
    %225 = vector.broadcast %cst_64 : f32 to vector<8x256xf32>
    %226 = arith.addf %225, %224 : vector<8x256xf32>
    %227 = arith.divf %225, %226 : vector<8x256xf32>
    %228 = vector.extract_strided_slice %227 {offsets = [0, 0], sizes = [8, 64], strides = [1, 1]} : vector<8x256xf32> to vector<8x64xf32>
    %229 = vector.extract_strided_slice %227 {offsets = [0, 64], sizes = [8, 64], strides = [1, 1]} : vector<8x256xf32> to vector<8x64xf32>
    %230 = vector.extract_strided_slice %227 {offsets = [0, 128], sizes = [8, 64], strides = [1, 1]} : vector<8x256xf32> to vector<8x64xf32>
    %231 = vector.extract_strided_slice %227 {offsets = [0, 192], sizes = [8, 64], strides = [1, 1]} : vector<8x256xf32> to vector<8x64xf32>
    %cst_65 = arith.constant 2.000000e+00 : f32
    %232 = vector.broadcast %cst_65 : f32 to vector<8x64xf32>
    %233 = arith.mulf %232, %231 : vector<8x64xf32>
    %cst_66 = arith.constant 1.000000e+00 : f32
    %234 = vector.broadcast %cst_66 : f32 to vector<8x64xf32>
    %235 = arith.subf %233, %234 : vector<8x64xf32>
    %236 = arith.mulf %229, %191 : vector<8x64xf32>
    %237 = arith.mulf %228, %235 : vector<8x64xf32>
    %238 = arith.addf %236, %237 : vector<8x64xf32>
    %239 = math.tanh %238 : vector<8x64xf32>
    %240 = arith.mulf %230, %239 : vector<8x64xf32>
    %c0_67 = arith.constant 0 : index
    %c0_68 = arith.constant 0 : index
    %241 = vector.load %arg2[%c0_67, %c0_68] : memref<64x800xf32, #tpu.memory_space<vmem>>, vector<64x512xf32>
    %cst_69 = arith.constant dense<0.000000e+00> : vector<8x512xf32>
    %242 = tpu.matmul %240, %241, %cst_69 {dimension_numbers = #tpu.dot_dimension_numbers<[1], [0], [0], [1], [0, 0, 1, 1], [], []>} : vector<8x64xf32>, vector<64x512xf32>, vector<8x512xf32> -> vector<8x512xf32>
    %243 = vector.extract_strided_slice %242 {offsets = [0, 0], sizes = [8, 256], strides = [1, 1]} : vector<8x512xf32> to vector<8x256xf32>
    %244 = vector.extract_strided_slice %242 {offsets = [0, 256], sizes = [8, 256], strides = [1, 1]} : vector<8x512xf32> to vector<8x256xf32>
    %245 = vector.broadcast %9 : vector<1x256xf32> to vector<8x256xf32>
    %246 = arith.addf %244, %245 : vector<8x256xf32>
    %c0_70 = arith.constant 0 : index
    %c512_71 = arith.constant 512 : index
    %247 = vector.load %arg2[%c0_70, %c512_71] : memref<64x800xf32, #tpu.memory_space<vmem>>, vector<64x256xf32>
    %cst_72 = arith.constant dense<0.000000e+00> : vector<8x256xf32>
    %248 = tpu.matmul %220, %247, %cst_72 {dimension_numbers = #tpu.dot_dimension_numbers<[1], [0], [0], [1], [0, 0, 1, 1], [], []>} : vector<8x64xf32>, vector<64x256xf32>, vector<8x256xf32> -> vector<8x256xf32>
    %249 = arith.addf %199, %248 : vector<8x256xf32>
    %250 = arith.negf %249 : vector<8x256xf32>
    %251 = math.exp %250 : vector<8x256xf32>
    %cst_73 = arith.constant 1.000000e+00 : f32
    %252 = vector.broadcast %cst_73 : f32 to vector<8x256xf32>
    %253 = arith.addf %252, %251 : vector<8x256xf32>
    %254 = arith.divf %252, %253 : vector<8x256xf32>
    %255 = vector.extract_strided_slice %254 {offsets = [0, 0], sizes = [8, 64], strides = [1, 1]} : vector<8x256xf32> to vector<8x64xf32>
    %256 = vector.extract_strided_slice %254 {offsets = [0, 64], sizes = [8, 64], strides = [1, 1]} : vector<8x256xf32> to vector<8x64xf32>
    %257 = vector.extract_strided_slice %254 {offsets = [0, 128], sizes = [8, 64], strides = [1, 1]} : vector<8x256xf32> to vector<8x64xf32>
    %258 = vector.extract_strided_slice %254 {offsets = [0, 192], sizes = [8, 64], strides = [1, 1]} : vector<8x256xf32> to vector<8x64xf32>
    %cst_74 = arith.constant 2.000000e+00 : f32
    %259 = vector.broadcast %cst_74 : f32 to vector<8x64xf32>
    %260 = arith.mulf %259, %258 : vector<8x64xf32>
    %cst_75 = arith.constant 1.000000e+00 : f32
    %261 = vector.broadcast %cst_75 : f32 to vector<8x64xf32>
    %262 = arith.subf %260, %261 : vector<8x64xf32>
    %263 = arith.mulf %256, %218 : vector<8x64xf32>
    %264 = arith.mulf %255, %262 : vector<8x64xf32>
    %265 = arith.addf %263, %264 : vector<8x64xf32>
    %266 = math.tanh %265 : vector<8x64xf32>
    %267 = arith.mulf %257, %266 : vector<8x64xf32>
    %c48 = arith.constant 48 : index
    %c0_76 = arith.constant 0 : index
    %268 = vector.load %arg5[%c48, %c0_76] : memref<64x256xf32, #tpu.memory_space<vmem>>, vector<8x256xf32>
    %269 = arith.addf %268, %243 : vector<8x256xf32>
    %270 = arith.negf %269 : vector<8x256xf32>
    %271 = math.exp %270 : vector<8x256xf32>
    %cst_77 = arith.constant 1.000000e+00 : f32
    %272 = vector.broadcast %cst_77 : f32 to vector<8x256xf32>
    %273 = arith.addf %272, %271 : vector<8x256xf32>
    %274 = arith.divf %272, %273 : vector<8x256xf32>
    %275 = vector.extract_strided_slice %274 {offsets = [0, 0], sizes = [8, 64], strides = [1, 1]} : vector<8x256xf32> to vector<8x64xf32>
    %276 = vector.extract_strided_slice %274 {offsets = [0, 64], sizes = [8, 64], strides = [1, 1]} : vector<8x256xf32> to vector<8x64xf32>
    %277 = vector.extract_strided_slice %274 {offsets = [0, 128], sizes = [8, 64], strides = [1, 1]} : vector<8x256xf32> to vector<8x64xf32>
    %278 = vector.extract_strided_slice %274 {offsets = [0, 192], sizes = [8, 64], strides = [1, 1]} : vector<8x256xf32> to vector<8x64xf32>
    %cst_78 = arith.constant 2.000000e+00 : f32
    %279 = vector.broadcast %cst_78 : f32 to vector<8x64xf32>
    %280 = arith.mulf %279, %278 : vector<8x64xf32>
    %cst_79 = arith.constant 1.000000e+00 : f32
    %281 = vector.broadcast %cst_79 : f32 to vector<8x64xf32>
    %282 = arith.subf %280, %281 : vector<8x64xf32>
    %283 = arith.mulf %276, %238 : vector<8x64xf32>
    %284 = arith.mulf %275, %282 : vector<8x64xf32>
    %285 = arith.addf %283, %284 : vector<8x64xf32>
    %286 = math.tanh %285 : vector<8x64xf32>
    %287 = arith.mulf %277, %286 : vector<8x64xf32>
    %c0_80 = arith.constant 0 : index
    %c0_81 = arith.constant 0 : index
    %288 = vector.load %arg2[%c0_80, %c0_81] : memref<64x800xf32, #tpu.memory_space<vmem>>, vector<64x512xf32>
    %cst_82 = arith.constant dense<0.000000e+00> : vector<8x512xf32>
    %289 = tpu.matmul %287, %288, %cst_82 {dimension_numbers = #tpu.dot_dimension_numbers<[1], [0], [0], [1], [0, 0, 1, 1], [], []>} : vector<8x64xf32>, vector<64x512xf32>, vector<8x512xf32> -> vector<8x512xf32>
    %290 = vector.extract_strided_slice %289 {offsets = [0, 0], sizes = [8, 256], strides = [1, 1]} : vector<8x512xf32> to vector<8x256xf32>
    %291 = vector.extract_strided_slice %289 {offsets = [0, 256], sizes = [8, 256], strides = [1, 1]} : vector<8x512xf32> to vector<8x256xf32>
    %292 = vector.broadcast %9 : vector<1x256xf32> to vector<8x256xf32>
    %293 = arith.addf %291, %292 : vector<8x256xf32>
    %c0_83 = arith.constant 0 : index
    %c512_84 = arith.constant 512 : index
    %294 = vector.load %arg2[%c0_83, %c512_84] : memref<64x800xf32, #tpu.memory_space<vmem>>, vector<64x256xf32>
    %cst_85 = arith.constant dense<0.000000e+00> : vector<8x256xf32>
    %295 = tpu.matmul %267, %294, %cst_85 {dimension_numbers = #tpu.dot_dimension_numbers<[1], [0], [0], [1], [0, 0, 1, 1], [], []>} : vector<8x64xf32>, vector<64x256xf32>, vector<8x256xf32> -> vector<8x256xf32>
    %296 = arith.addf %246, %295 : vector<8x256xf32>
    %297 = arith.negf %296 : vector<8x256xf32>
    %298 = math.exp %297 : vector<8x256xf32>
    %cst_86 = arith.constant 1.000000e+00 : f32
    %299 = vector.broadcast %cst_86 : f32 to vector<8x256xf32>
    %300 = arith.addf %299, %298 : vector<8x256xf32>
    %301 = arith.divf %299, %300 : vector<8x256xf32>
    %302 = vector.extract_strided_slice %301 {offsets = [0, 0], sizes = [8, 64], strides = [1, 1]} : vector<8x256xf32> to vector<8x64xf32>
    %303 = vector.extract_strided_slice %301 {offsets = [0, 64], sizes = [8, 64], strides = [1, 1]} : vector<8x256xf32> to vector<8x64xf32>
    %304 = vector.extract_strided_slice %301 {offsets = [0, 128], sizes = [8, 64], strides = [1, 1]} : vector<8x256xf32> to vector<8x64xf32>
    %305 = vector.extract_strided_slice %301 {offsets = [0, 192], sizes = [8, 64], strides = [1, 1]} : vector<8x256xf32> to vector<8x64xf32>
    %cst_87 = arith.constant 2.000000e+00 : f32
    %306 = vector.broadcast %cst_87 : f32 to vector<8x64xf32>
    %307 = arith.mulf %306, %305 : vector<8x64xf32>
    %cst_88 = arith.constant 1.000000e+00 : f32
    %308 = vector.broadcast %cst_88 : f32 to vector<8x64xf32>
    %309 = arith.subf %307, %308 : vector<8x64xf32>
    %310 = arith.mulf %303, %265 : vector<8x64xf32>
    %311 = arith.mulf %302, %309 : vector<8x64xf32>
    %312 = arith.addf %310, %311 : vector<8x64xf32>
    %313 = math.tanh %312 : vector<8x64xf32>
    %314 = arith.mulf %304, %313 : vector<8x64xf32>
    %c56 = arith.constant 56 : index
    %c0_89 = arith.constant 0 : index
    %315 = vector.load %arg5[%c56, %c0_89] : memref<64x256xf32, #tpu.memory_space<vmem>>, vector<8x256xf32>
    %316 = arith.addf %315, %290 : vector<8x256xf32>
    %317 = arith.negf %316 : vector<8x256xf32>
    %318 = math.exp %317 : vector<8x256xf32>
    %cst_90 = arith.constant 1.000000e+00 : f32
    %319 = vector.broadcast %cst_90 : f32 to vector<8x256xf32>
    %320 = arith.addf %319, %318 : vector<8x256xf32>
    %321 = arith.divf %319, %320 : vector<8x256xf32>
    %322 = vector.extract_strided_slice %321 {offsets = [0, 0], sizes = [8, 64], strides = [1, 1]} : vector<8x256xf32> to vector<8x64xf32>
    %323 = vector.extract_strided_slice %321 {offsets = [0, 64], sizes = [8, 64], strides = [1, 1]} : vector<8x256xf32> to vector<8x64xf32>
    %324 = vector.extract_strided_slice %321 {offsets = [0, 128], sizes = [8, 64], strides = [1, 1]} : vector<8x256xf32> to vector<8x64xf32>
    %325 = vector.extract_strided_slice %321 {offsets = [0, 192], sizes = [8, 64], strides = [1, 1]} : vector<8x256xf32> to vector<8x64xf32>
    %cst_91 = arith.constant 2.000000e+00 : f32
    %326 = vector.broadcast %cst_91 : f32 to vector<8x64xf32>
    %327 = arith.mulf %326, %325 : vector<8x64xf32>
    %cst_92 = arith.constant 1.000000e+00 : f32
    %328 = vector.broadcast %cst_92 : f32 to vector<8x64xf32>
    %329 = arith.subf %327, %328 : vector<8x64xf32>
    %330 = arith.mulf %323, %285 : vector<8x64xf32>
    %331 = arith.mulf %322, %329 : vector<8x64xf32>
    %332 = arith.addf %330, %331 : vector<8x64xf32>
    %333 = math.tanh %332 : vector<8x64xf32>
    %334 = arith.mulf %324, %333 : vector<8x64xf32>
    %c0_93 = arith.constant 0 : index
    %c0_94 = arith.constant 0 : index
    %335 = vector.load %arg2[%c0_93, %c0_94] : memref<64x800xf32, #tpu.memory_space<vmem>>, vector<64x512xf32>
    %cst_95 = arith.constant dense<0.000000e+00> : vector<8x512xf32>
    %336 = tpu.matmul %334, %335, %cst_95 {dimension_numbers = #tpu.dot_dimension_numbers<[1], [0], [0], [1], [0, 0, 1, 1], [], []>} : vector<8x64xf32>, vector<64x512xf32>, vector<8x512xf32> -> vector<8x512xf32>
    %337 = vector.extract_strided_slice %336 {offsets = [0, 256], sizes = [8, 256], strides = [1, 1]} : vector<8x512xf32> to vector<8x256xf32>
    %338 = vector.broadcast %9 : vector<1x256xf32> to vector<8x256xf32>
    %339 = arith.addf %337, %338 : vector<8x256xf32>
    %c0_96 = arith.constant 0 : index
    %c512_97 = arith.constant 512 : index
    %340 = vector.load %arg2[%c0_96, %c512_97] : memref<64x800xf32, #tpu.memory_space<vmem>>, vector<64x256xf32>
    %cst_98 = arith.constant dense<0.000000e+00> : vector<8x256xf32>
    %341 = tpu.matmul %314, %340, %cst_98 {dimension_numbers = #tpu.dot_dimension_numbers<[1], [0], [0], [1], [0, 0, 1, 1], [], []>} : vector<8x64xf32>, vector<64x256xf32>, vector<8x256xf32> -> vector<8x256xf32>
    %342 = arith.addf %293, %341 : vector<8x256xf32>
    %343 = arith.negf %342 : vector<8x256xf32>
    %344 = math.exp %343 : vector<8x256xf32>
    %cst_99 = arith.constant 1.000000e+00 : f32
    %345 = vector.broadcast %cst_99 : f32 to vector<8x256xf32>
    %346 = arith.addf %345, %344 : vector<8x256xf32>
    %347 = arith.divf %345, %346 : vector<8x256xf32>
    %348 = vector.extract_strided_slice %347 {offsets = [0, 0], sizes = [8, 64], strides = [1, 1]} : vector<8x256xf32> to vector<8x64xf32>
    %349 = vector.extract_strided_slice %347 {offsets = [0, 64], sizes = [8, 64], strides = [1, 1]} : vector<8x256xf32> to vector<8x64xf32>
    %350 = vector.extract_strided_slice %347 {offsets = [0, 128], sizes = [8, 64], strides = [1, 1]} : vector<8x256xf32> to vector<8x64xf32>
    %351 = vector.extract_strided_slice %347 {offsets = [0, 192], sizes = [8, 64], strides = [1, 1]} : vector<8x256xf32> to vector<8x64xf32>
    %cst_100 = arith.constant 2.000000e+00 : f32
    %352 = vector.broadcast %cst_100 : f32 to vector<8x64xf32>
    %353 = arith.mulf %352, %351 : vector<8x64xf32>
    %cst_101 = arith.constant 1.000000e+00 : f32
    %354 = vector.broadcast %cst_101 : f32 to vector<8x64xf32>
    %355 = arith.subf %353, %354 : vector<8x64xf32>
    %356 = arith.mulf %349, %312 : vector<8x64xf32>
    %357 = arith.mulf %348, %355 : vector<8x64xf32>
    %358 = arith.addf %356, %357 : vector<8x64xf32>
    %359 = math.tanh %358 : vector<8x64xf32>
    %360 = arith.mulf %350, %359 : vector<8x64xf32>
    %c0_102 = arith.constant 0 : index
    %c512_103 = arith.constant 512 : index
    %361 = vector.load %arg2[%c0_102, %c512_103] : memref<64x800xf32, #tpu.memory_space<vmem>>, vector<64x256xf32>
    %cst_104 = arith.constant dense<0.000000e+00> : vector<8x256xf32>
    %362 = tpu.matmul %360, %361, %cst_104 {dimension_numbers = #tpu.dot_dimension_numbers<[1], [0], [0], [1], [0, 0, 1, 1], [], []>} : vector<8x64xf32>, vector<64x256xf32>, vector<8x256xf32> -> vector<8x256xf32>
    %363 = arith.addf %339, %362 : vector<8x256xf32>
    %364 = arith.negf %363 : vector<8x256xf32>
    %365 = math.exp %364 : vector<8x256xf32>
    %cst_105 = arith.constant 1.000000e+00 : f32
    %366 = vector.broadcast %cst_105 : f32 to vector<8x256xf32>
    %367 = arith.addf %366, %365 : vector<8x256xf32>
    %368 = arith.divf %366, %367 : vector<8x256xf32>
    %369 = vector.extract_strided_slice %368 {offsets = [0, 0], sizes = [8, 64], strides = [1, 1]} : vector<8x256xf32> to vector<8x64xf32>
    %370 = vector.extract_strided_slice %368 {offsets = [0, 64], sizes = [8, 64], strides = [1, 1]} : vector<8x256xf32> to vector<8x64xf32>
    %371 = vector.extract_strided_slice %368 {offsets = [0, 128], sizes = [8, 64], strides = [1, 1]} : vector<8x256xf32> to vector<8x64xf32>
    %372 = vector.extract_strided_slice %368 {offsets = [0, 192], sizes = [8, 64], strides = [1, 1]} : vector<8x256xf32> to vector<8x64xf32>
    %cst_106 = arith.constant 2.000000e+00 : f32
    %373 = vector.broadcast %cst_106 : f32 to vector<8x64xf32>
    %374 = arith.mulf %373, %372 : vector<8x64xf32>
    %cst_107 = arith.constant 1.000000e+00 : f32
    %375 = vector.broadcast %cst_107 : f32 to vector<8x64xf32>
    %376 = arith.subf %374, %375 : vector<8x64xf32>
    %377 = arith.mulf %370, %358 : vector<8x64xf32>
    %378 = arith.mulf %369, %376 : vector<8x64xf32>
    %379 = arith.addf %377, %378 : vector<8x64xf32>
    %380 = math.tanh %379 : vector<8x64xf32>
    %381 = arith.mulf %371, %380 : vector<8x64xf32>
    %c0_108 = arith.constant 0 : index
    %c768 = arith.constant 768 : index
    %382 = vector.load %arg2[%c0_108, %c768] : memref<64x800xf32, #tpu.memory_space<vmem>>, vector<64x32xf32>
    %cst_109 = arith.constant dense<0.000000e+00> : vector<8x32xf32>
    %383 = tpu.matmul %381, %382, %cst_109 {dimension_numbers = #tpu.dot_dimension_numbers<[1], [0], [0], [1], [0, 0, 1, 1], [], []>} : vector<8x64xf32>, vector<64x32xf32>, vector<8x32xf32> -> vector<8x32xf32>
    %c3 = arith.constant 3 : index
    %c0_110 = arith.constant 0 : index
    %384 = vector.load %arg1[%c3, %c0_110] : memref<8x256xf32, #tpu.memory_space<vmem>>, vector<1x32xf32>
    %385 = vector.broadcast %384 : vector<1x32xf32> to vector<8x32xf32>
    %386 = arith.addf %383, %385 : vector<8x32xf32>
    %cst_111 = arith.constant 0.000000e+00 : f32
    %387 = vector.broadcast %cst_111 : f32 to vector<8x32xf32>
    %388 = arith.maximumf %386, %387 : vector<8x32xf32>
    %c0_112 = arith.constant 0 : index
    %c0_113 = arith.constant 0 : index
    %389 = vector.load %arg3[%c0_112, %c0_113] : memref<32x2xf32, #tpu.memory_space<vmem>>, vector<32x2xf32>
    %cst_114 = arith.constant dense<0.000000e+00> : vector<8x2xf32>
    %390 = tpu.matmul %388, %389, %cst_114 {dimension_numbers = #tpu.dot_dimension_numbers<[1], [0], [0], [1], [0, 0, 1, 1], [], []>} : vector<8x32xf32>, vector<32x2xf32>, vector<8x2xf32> -> vector<8x2xf32>
    %c4 = arith.constant 4 : index
    %c0_115 = arith.constant 0 : index
    %391 = vector.load %arg1[%c4, %c0_115] : memref<8x256xf32, #tpu.memory_space<vmem>>, vector<1x2xf32>
    %392 = vector.broadcast %391 : vector<1x2xf32> to vector<8x2xf32>
    %393 = arith.addf %390, %392 : vector<8x2xf32>
    %c0_116 = arith.constant 0 : index
    %c0_117 = arith.constant 0 : index
    %394 = vector.load %arg4[%c0_116, %c0_117] : memref<8x2xf32, #tpu.memory_space<vmem>>, vector<8x2xf32>
    tpu.vector_store %arg4[%c0_116, %c0_117], %393 {strides = array<i32>} : memref<8x2xf32, #tpu.memory_space<vmem>>, vector<8x2xf32>,
    return
  }
}

</mosaic_0001>

<bundles_post_ra>
// kernel: tpu_custom_call.1
= control target key start
LH: loop header
LB: loop body
LE: loop exit
PB: predicated region body
PF: predicated region fallthrough
CT: control target
= control target key end

     0   :  { %9 = vsyncpa [#allocation4], 0  ;;  %s3256_s15 = smov [#allocation3]   ;;  %s3804_s0 = inlined_call_operand.vmem [shape: f32[64,1], index: 0, kind: input, shape index: {}]   ;;  %s3805_s1 = inlined_call_operand.vmem [shape: f32[8,256], index: 1, kind: input, shape index: {}]   ;;  %s3806_s2 = inlined_call_operand.hbm [shape: f32[64,800], index: 2, kind: input, shape index: {}]   ;;  %s3807_s3 = inlined_call_operand.vmem [shape: f32[32,2], index: 3, kind: input, shape index: {}]   ;;  %s3808_s4 = inlined_call_operand.vmem [shape: f32[8,2], index: 4, kind: output, shape index: {}]  }
   0x1   :  { %s19_s16 = sshll.u32 %s3256_s15, 4  ;;  %s3232_s19 = scalar_lea.hbm %s3806_s2, 7168  ;;  %s20_s16 = int_to_ptr.vmem [resolvable:$true] %s19_s16 }
   0x2   :  { %p3233_p0 = scmp.ne.s32.totalorder %s3806_s2, %s3232_s19  ;;  %p3236_p1 = scmp.lt.u32.totalorder %s3232_s19, %s3806_s2 }
   0x4   :  { %p3238_p2 = pnand %p3236_p1, %p3233_p0 }
   0x6   :  { %3241 = shalt.err (!%p3238_p2)
}
   0x7   :  { %s3242_s24 = scalar_lea.vmem %s20_s16, 7168  ;;  %p3247_p4 = scmp.lt.s32.totalorder %s20_s16, %s20_s16 }
   0x8   :  { %p3243_p3 = scmp.ne.s32.totalorder %s20_s16, %s3242_s24  ;;  %p3248_p5 = scmp.lt.s32.totalorder %s3242_s24, %s3242_s24 }
   0xa   :  { %p3249_p6 = por %p3248_p5, %p3247_p4 }
   0xc   :  { %p3250_p7 = pnand %p3249_p6, %p3243_p3 }
   0xe   :  { %3253 = shalt.err (!%p3250_p7)
}
   0xf   :  { %s3257_s25 = smov 896   ;;  %s3258_s26 = smov 56  }
  0x10   :  { %25 = dma.hbm_to_vmem [thread:$0]  %s3806_s2, 7168, %s20_s16, [#allocation4], %s3257_s25, %s3257_s25, %s3258_s26  }
  0x11   :  { %3254 = dma.done.wait [#allocation4], 7168  }
  0x12   :  { %3255 = vsyncadd [#allocation4], 4294960128  ;;  %v3259_v0 = vmov 0   ;;  %v31_v1 = vld [vmem:[%s3804_s0] sm:$0xff]  ;;  %v81_v2 = vlaneseq  ;;  %s3260_s8 = smov 64   ;;  %v32_v18 = vld [vmem:[%s3804_s0 + $0x8] sm:$0xff] }
  0x13   :  { %3070 = vset.pattern.permute.xlu0 %v3259_v0  ;;  %3071 = vset.pattern.permute.xlu1 %v3259_v0  ;;  %v39_v5 = vld [vmem:[%s3805_s1] ss:$8 sm:$0x3]  ;;  %v2546_v6 = vld [vmem:[%s3805_s1 + $0x1] ss:$8 sm:$0x3] }
  0x14   :  { %42 = vperm.xlu0 %3070, %v31_v1   ;;  %v82_v3 = vshrl.u32 %v81_v2, 7  ;;  %v188_v30 = vld [vmem:[#allocation3 + $0x8] sm:$0xff]  ;;  %v192_v31 = vld [vmem:[#allocation3 + $0x40] sm:$0xff]  ;;  %v190_v32 = vld [vmem:[#allocation3 + $0x18] sm:$0xff]  ;;  %vm219_vm0 = vcmask 523264   ;;  %vm3263_vm1 = vmmov 0  }
  0x15   :  { %v3341_v33 = vpack.c.bf16 %v192_v31, %v188_v30  ;;  %v194_v34 = vld [vmem:[#allocation3 + $0x50] sm:$0xff]  ;;  %v187_v35 = vld [vmem:[#allocation3] sm:$0xff]  ;;  %v191_v36 = vld [vmem:[#allocation3 + $0x38] sm:$0xff]  ;;  %vm2465_vm2 = vcmask 261120   ;;  %vm2539_vm3 = vcmask 15360  }
  0x16   :  { %v3304_v4 = vsub.s32 1, %v82_v3  ;;  %v3327_v19 = vsub.s32 0, %v82_v3  ;;  %v3343_v37 = vpack.c.bf16 %v194_v34, %v190_v32  ;;  %v3345_v38 = vpack.c.bf16 %v191_v36, %v187_v35  ;;  %v189_v39 = vld [vmem:[#allocation3 + $0x10] sm:$0xff]  ;;  %v193_v40 = vld [vmem:[#allocation3 + $0x48] sm:$0xff]  ;;  %v196_v41 = vld [vmem:[#allocation3 + $0x78] sm:$0xff] }
  0x17   :  { %2665 = vmatprep.subr.bf16.mxu0 %v3341_v33  ;;  %v3348_v42 = vpack.c.bf16 %v193_v40, %v189_v39  ;;  %v200_v43 = vld [vmem:[#allocation3 + $0xb0] sm:$0xff]  ;;  %v198_v44 = vld [vmem:[#allocation3 + $0x88] sm:$0xff]  ;;  %v202_v45 = vld [vmem:[#allocation3 + $0xc0] sm:$0xff] }
  0x18   :  { %v3313_v7 = vrot.slane %v39_v5, %v3304_v4  ;;  %v3316_v8 = vrot.slane %v2546_v6, %v3304_v4  ;;  %v3330_v20 = vrot.slane %v39_v5, %v3327_v19  ;;  %v3333_v21 = vrot.slane %v2546_v6, %v3327_v19  ;;  %2681 = vmatprep.subr.bf16.mxu1 %v3343_v37  ;;  %v195_v48 = vld [vmem:[#allocation3 + $0x70] sm:$0xff]  ;;  %v199_v49 = vld [vmem:[#allocation3 + $0xa8] sm:$0xff]  ;;  %v197_v50 = vld [vmem:[#allocation3 + $0x80] sm:$0xff] }
  0x19   :  { %2667 = vmatpush1.bf16.msra.mxu0 %v3345_v38  ;;  %v3352_v46 = vpack.c.bf16 %v200_v43, %v196_v41  ;;  %v3354_v47 = vpack.c.bf16 %v202_v45, %v198_v44  ;;  %2683 = vmatpush1.bf16.msra.mxu1 %v3348_v42  ;;  %v3357_v51 = vpack.c.bf16 %v199_v49, %v195_v48  ;;  %v201_v52 = vld [vmem:[#allocation3 + $0xb8] sm:$0xff]  ;;  %v204_v53 = vld [vmem:[#allocation3 + $0xe8] sm:$0xff]  ;;  %v208_v54 = vld [vmem:[#allocation3 + $0x120] sm:$0xff] }
  0x1a   :  { %v3361_v55 = vpack.c.bf16 %v201_v52, %v197_v50  ;;  %v3363_v56 = vpack.c.bf16 %v208_v54, %v204_v53  ;;  %v206_v57 = vld [vmem:[#allocation3 + $0xf8] sm:$0xff]  ;;  %v210_v58 = vld [vmem:[#allocation3 + $0x130] sm:$0xff]  ;;  %v203_v59 = vld [vmem:[#allocation3 + $0xe0] sm:$0xff] }
  0x1b   :  { %2669 = vmatprep.subr.bf16.mxu0 %v3352_v46  ;;  %2685 = vmatprep.subr.bf16.mxu1 %v3354_v47  ;;  %v3365_v60 = vpack.c.bf16 %v210_v58, %v206_v57  ;;  %v207_v61 = vld [vmem:[#allocation3 + $0x118] sm:$0xff]  ;;  %v205_v62 = vld [vmem:[#allocation3 + $0xf0] sm:$0xff]  ;;  %v209_v63 = vld [vmem:[#allocation3 + $0x128] sm:$0xff] }
  0x1c   :  { %v3368_v0 = vpack.c.bf16 %v207_v61, %v203_v59  ;;  %v212_v1 = vld [vmem:[#allocation3 + $0x158] sm:$0xff]  ;;  %v216_v2 = vld [vmem:[#allocation3 + $0x190] sm:$0xff]  ;;  %v214_v3 = vld [vmem:[#allocation3 + $0x168] sm:$0xff]  ;;  %v3372_v5 = vpack.c.bf16 %v209_v63, %v205_v62 }
  0x1d   :  { %2671 = vmatpush1.bf16.msra.mxu0 %v3357_v51  ;;  %2687 = vmatpush1.bf16.msra.mxu1 %v3361_v55  ;;  %v3374_v6 = vpack.c.bf16 %v216_v2, %v212_v1  ;;  %v2547_v48 = vld [vmem:[%s3805_s1 + $0x2] ss:$8 sm:$0x3] }
  0x1e   :  { %2673 = vmatprep.subr.bf16.mxu0 %v3363_v56  ;;  %2689 = vmatprep.subr.bf16.mxu1 %v3365_v60  ;;  %v3428_v50 = vrot.slane %v2547_v48, %v3304_v4  ;;  %v33_v4 = vld [vmem:[%s3804_s0 + $0x10] sm:$0xff] }
  0x21   :  { %2675 = vmatpush1.bf16.msra.mxu0 %v3368_v0  ;;  %2691 = vmatpush1.bf16.msra.mxu1 %v3372_v5 }
  0x22   :  { %2677 = vmatprep.subr.bf16.mxu0 %v3374_v6 }
  0x93   :  { %v43_v9 = vpop.permute.xlu0 %42 }
  0x94   :  { %v92_v10 = vmul.f32 %v3313_v7, %v43_v9  ;;  %v91_v22 = vmul.f32 %v3330_v20, %v43_v9  ;;  %v218_v9 = vld [vmem:[#allocation3 + $0x1a0] sm:$0xff] }
  0x96   :  { %v121_v11 = vadd.f32 %v3316_v8, %v92_v10  ;;  %v120_v23 = vadd.f32 %v3333_v21, %v91_v22  ;;  %v211_v10 = vld [vmem:[#allocation3 + $0x150] sm:$0xff] }
  0x98   :  { %v2549_v12 = vmul.f32 -1.442695, %v121_v11  ;;  %v2548_v24 = vmul.f32 -1.442695, %v120_v23  ;;  %v215_v11 = vld [vmem:[#allocation3 + $0x188] sm:$0xff] }
  0x9a   :  { %3072 = vpow2.f32 %v2549_v12  ;;  %v3377_v12 = vpack.c.bf16 %v218_v9, %v214_v3 }
  0x9c   :  { %2693 = vmatprep.subr.bf16.mxu1 %v3377_v12 }
  0xa4   :  { %v3073_v13 = vpop.eup %3072 }
  0xa5   :  { %v163_v14 = vadd.f32 1.0, %v3073_v13  ;;  %v213_v13 = vld [vmem:[#allocation3 + $0x160] sm:$0xff] }
  0xa7   :  { %3074 = vrcp.f32 %v163_v14  ;;  %v217_v14 = vld [vmem:[#allocation3 + $0x198] sm:$0xff] }
  0xa8   :  { %3076 = vpow2.f32 %v2548_v24  ;;  %v3261_v24 = vmov 0.0  }
  0xa9   :  { %287 = vmatprep.mubr.f32.mxu0 %v3261_v24  ;;  %358 = vmatprep.mubr.f32.mxu1 %v3261_v24 }
  0xb1   :  { %v3320_v15 = vpop.eup %3074 }
  0xb2   :  { %v168_v16 = vmul.f32 2.0, %v3320_v15  ;;  %v3077_v25 = vpop.eup %3076 }
  0xb3   :  { %v162_v26 = vadd.f32 1.0, %v3077_v25 }
  0xb4   :  { %v2550_v17 = vadd.f32 -1.0, %v168_v16  ;;  %v3380_v16 = vpack.c.bf16 %v215_v11, %v211_v10  ;;  %v3440_v11 = vrot.slane %v2547_v48, %v3327_v19 }
  0xb5   :  { %3078 = vrcp.f32 %v162_v26 }
  0xb6   :  { %172 = vrot.lane.b32.xlu0 %v2550_v17, %s3260_s8  ;;  %v3384_v17 = vpack.c.bf16 %v217_v14, %v213_v13  ;;  %2679 = vmatpush1.bf16.msra.mxu0 %v3380_v16 }
  0xb7   :  { %2697 = vmatprep.subr.bf16.mxu0 %v3341_v33 }
  0xb8   :  { %2695 = vmatpush1.bf16.msra.mxu1 %v3384_v17 }
  0xb9   :  { %2713 = vmatprep.subr.bf16.mxu1 %v3343_v37 }
  0xba   :  { %47 = vperm.xlu0 %3070, %v32_v18  }
  0xbf   :  { %v3337_v27 = vpop.eup %3078 }
  0xc0   :  { %v170_v18 = vmul.f32 0.0, %v3337_v27 }
 0x128   :  { %v173_v28 = vpop.permute.xlu0 %172 }
 0x129   :  { %v175_v29 = vmul.f32 %v3337_v27, %v173_v28 }
 0x12b   :  { %177 = vrot.lane.b32.xlu1 %v175_v29, %s3260_s8 }
 0x19d   :  { %v178_v22 = vpop.permute.xlu1 %177 }
 0x19e   :  { %v3392_v23 = vadd.f32 %v178_v22, %v170_v18 }
 0x1a0   :  { %3080 = vtanh.f32 %v3392_v23 }
 0x1aa   :  { %v3081_v25 = vpop.eup %3080 }
 0x1ab   :  { %183 = vrot.lane.b32.xlu1 %v3081_v25, %s3260_s8 }
 0x21d   :  { %v184_v26 = vpop.permute.xlu1 %183 }
 0x21e   :  { %v186_v28 = vmul.f32 %v3320_v15, %v184_v26  ;;  %v48_v15 = vpop.permute.xlu0 %47 }
 0x21f   :  { %v94_v27 = vmul.f32 %v3313_v7, %v48_v15  ;;  %v93_v45 = vmul.f32 %v3330_v20, %v48_v15 }
 0x220   :  { %2551 = vmatmul.mubr.msk.f32.vlgmr.msra.gmra.mrb[0].mxu0 %vm219_vm0, %v186_v28  ;;  %2552 = vmatmul.mubr.msk.f32.vlgmr.msra.gmra.mrb[0].mxu1 %vm219_vm0, %v186_v28 }
 0x221   :  { %2699 = vmatpush1.bf16.msra.mxu0 %v3345_v38  ;;  %2715 = vmatpush1.bf16.msra.mxu1 %v3348_v42  ;;  %v123_v31 = vadd.f32 %v3316_v8, %v94_v27  ;;  %v122_v49 = vadd.f32 %v3333_v21, %v93_v45 }
 0x222   :  { %2701 = vmatprep.subr.bf16.mxu0 %v3352_v46  ;;  %2717 = vmatprep.subr.bf16.mxu1 %v3354_v47 }
 0x223   :  { %480 = vmatprep.mubr.f32.mxu0 %v3261_v24  ;;  %551 = vmatprep.mubr.f32.mxu1 %v3261_v24 }
 0x225   :  { %2703 = vmatpush1.bf16.msra.mxu0 %v3357_v51  ;;  %2719 = vmatpush1.bf16.msra.mxu1 %v3361_v55 }
 0x226   :  { %2705 = vmatprep.subr.bf16.mxu0 %v3363_v56  ;;  %2721 = vmatprep.subr.bf16.mxu1 %v3365_v60 }
 0x229   :  { %2707 = vmatpush1.bf16.msra.mxu0 %v3368_v0  ;;  %2723 = vmatpush1.bf16.msra.mxu1 %v3372_v5 }
 0x22a   :  { %2709 = vmatprep.subr.bf16.mxu0 %v3374_v6  ;;  %2725 = vmatprep.subr.bf16.mxu1 %v3377_v12 }
 0x22d   :  { %2711 = vmatpush1.bf16.msra.mxu0 %v3380_v16  ;;  %2727 = vmatpush1.bf16.msra.mxu1 %v3384_v17 }
 0x22e   :  { %2745 = vmatprep.subr.bf16.mxu1 %v3343_v37  ;;  %2729 = vmatprep.subr.bf16.mxu0 %v3341_v33 }
 0x2f3   :  { %v289_v29 = vpop.f32.mrb[0].mxu0  ;;  %v360_v30 = vpop.f32.mrb[0].mxu1 }
 0x2f4   :  { %v291_v32 = vpop.f32.mrb[1].mxu0  ;;  %v362_v34 = vpop.f32.mrb[1].mxu1  ;;  %v380_v52 = vadd.f32 %v289_v29, %v122_v49  ;;  %v376_v13 = vadd.f32 %v3440_v11, %v360_v30 }
 0x2f5   :  { %v381_v35 = vadd.f32 %v291_v32, %v123_v31  ;;  %v377_v53 = vadd.f32 %v3428_v50, %v362_v34 }
 0x2f6   :  { %v2553_v54 = vmul.f32 -1.442695, %v380_v52  ;;  %v2558_v14 = vmul.f32 -1.442695, %v376_v13  ;;  %v774_v13 = vld [vmem:[#allocation3 + $0x28] sm:$0xff] }
 0x2f7   :  { %v2554_v36 = vmul.f32 -1.442695, %v381_v35  ;;  %v2559_v57 = vmul.f32 -1.442695, %v377_v53 }
 0x2f9   :  { %3082 = vpow2.f32 %v2554_v36 }
 0x303   :  { %v3083_v39 = vpop.eup %3082 }
 0x304   :  { %v389_v40 = vadd.f32 1.0, %v3083_v39 }
 0x306   :  { %3084 = vrcp.f32 %v389_v40 }
 0x307   :  { %3086 = vpow2.f32 %v2553_v54 }
 0x308   :  { %3088 = vpow2.f32 %v2559_v57 }
 0x310   :  { %v3085_v41 = vpop.eup %3084 }
 0x311   :  { %v394_v43 = vmul.f32 2.0, %v3085_v41  ;;  %v3087_v58 = vpop.eup %3086 }
 0x312   :  { %v3089_v59 = vpop.eup %3088  ;;  %v388_v61 = vadd.f32 1.0, %v3087_v58 }
 0x313   :  { %v2555_v44 = vadd.f32 -1.0, %v394_v43  ;;  %v567_v62 = vadd.f32 1.0, %v3089_v59 }
 0x314   :  { %3090 = vrcp.f32 %v388_v61 }
 0x315   :  { %398 = vrot.lane.b32.xlu1 %v2555_v44, %s3260_s8  ;;  %3092 = vrcp.f32 %v567_v62 }
 0x316   :  { %3094 = vpow2.f32 %v2558_v14  ;;  %v776_v14 = vld [vmem:[#allocation3 + $0x60] sm:$0xff] }
 0x31e   :  { %v3091_v63 = vpop.eup %3090 }
 0x31f   :  { %v3431_v3 = vpop.eup %3092  ;;  %v396_v18 = vmul.f32 %v3091_v63, %v3392_v23 }
 0x320   :  { %v572_v9 = vmul.f32 2.0, %v3431_v3  ;;  %v3095_v26 = vpop.eup %3094 }
 0x321   :  { %v566_v28 = vadd.f32 1.0, %v3095_v26 }
 0x322   :  { %v2560_v10 = vadd.f32 -1.0, %v572_v9 }
 0x387   :  { %v399_v1 = vpop.permute.xlu1 %398 }
 0x388   :  { %v401_v2 = vmul.f32 %v3091_v63, %v399_v1 }
 0x38a   :  { %403 = vrot.lane.b32.xlu0 %v401_v2, %s3260_s8 }
 0x38e   :  { %52 = vperm.xlu0 %3070, %v33_v4  }
 0x392   :  { %576 = vrot.lane.b32.xlu0 %v2560_v10, %s3260_s8 }
 0x3fc   :  { %v404_v22 = vpop.permute.xlu0 %403 }
 0x3fd   :  { %v3444_v25 = vadd.f32 %v404_v22, %v396_v18  ;;  %v3481_v22 = vpack.c.bf16 %v776_v14, %v774_v13 }
 0x3ff   :  { %3096 = vtanh.f32 %v3444_v25 }
 0x400   :  { %3098 = vrcp.f32 %v566_v28  ;;  %v34_v28 = vld [vmem:[%s3804_s0 + $0x18] sm:$0xff] }
 0x409   :  { %v3097_v15 = vpop.eup %3096 }
 0x40a   :  { %409 = vrot.lane.b32.xlu1 %v3097_v15, %s3260_s8  ;;  %v3099_v19 = vpop.eup %3098  ;;  %v775_v15 = vld [vmem:[#allocation3 + $0x58] sm:$0xff] }
 0x40b   :  { %v574_v23 = vmul.f32 0.0, %v3099_v19 }
 0x40d   :  { %v53_v27 = vpop.permute.xlu0 %52 }
 0x40e   :  { %v95_v39 = vmul.f32 %v3330_v20, %v53_v27  ;;  %v96_v40 = vmul.f32 %v3313_v7, %v53_v27  ;;  %v778_v27 = vld [vmem:[#allocation3 + $0x98] sm:$0xff] }
 0x410   :  { %v125_v44 = vadd.f32 %v3316_v8, %v96_v40 }
 0x411   :  { %v577_v29 = vpop.permute.xlu0 %576 }
 0x412   :  { %v579_v31 = vmul.f32 %v3099_v19, %v577_v29  ;;  %v780_v19 = vld [vmem:[#allocation3 + $0xd0] sm:$0xff] }
 0x414   :  { %581 = vrot.lane.b32.xlu0 %v579_v31, %s3260_s8 }
 0x47c   :  { %v410_v30 = vpop.permute.xlu1 %409 }
 0x47d   :  { %v412_v32 = vmul.f32 %v3085_v41, %v410_v30  ;;  %v124_v41 = vadd.f32 %v3333_v21, %v95_v39  ;;  %v784_v39 = vld [vmem:[#allocation3 + $0x140] sm:$0xff] }
 0x47f   :  { %2556 = vmatmul.mubr.msk.f32.vlgmr.msra.gmra.mrb[2].mxu0 %vm219_vm0, %v412_v32  ;;  %2557 = vmatmul.mubr.msk.f32.vlgmr.msra.gmra.mrb[2].mxu1 %vm219_vm0, %v412_v32  ;;  %v3491_v32 = vpack.c.bf16 %v780_v19, %v778_v27 }
 0x480   :  { %2747 = vmatpush1.bf16.msra.mxu1 %v3348_v42  ;;  %2731 = vmatpush1.bf16.msra.mxu0 %v3345_v38 }
 0x481   :  { %2749 = vmatprep.subr.bf16.mxu1 %v3354_v47  ;;  %2733 = vmatprep.subr.bf16.mxu0 %v3352_v46 }
 0x482   :  { %693 = vmatprep.mubr.f32.mxu0 %v3261_v24  ;;  %764 = vmatprep.mubr.f32.mxu1 %v3261_v24 }
 0x484   :  { %2751 = vmatpush1.bf16.msra.mxu1 %v3361_v55  ;;  %2735 = vmatpush1.bf16.msra.mxu0 %v3357_v51 }
 0x485   :  { %2753 = vmatprep.subr.bf16.mxu1 %v3365_v60  ;;  %2737 = vmatprep.subr.bf16.mxu0 %v3363_v56 }
 0x486   :  { %v582_v34 = vpop.permute.xlu0 %581 }
 0x487   :  { %v3461_v35 = vadd.f32 %v582_v34, %v574_v23  ;;  %v777_v23 = vld [vmem:[#allocation3 + $0x90] sm:$0xff]  ;;  %v779_v34 = vld [vmem:[#allocation3 + $0xc8] sm:$0xff] }
 0x488   :  { %2755 = vmatpush1.bf16.msra.mxu1 %v3372_v5  ;;  %2739 = vmatpush1.bf16.msra.mxu0 %v3368_v0  ;;  %v3496_v40 = vpack.c.bf16 %v779_v34, %v777_v23 }
 0x489   :  { %3100 = vtanh.f32 %v3461_v35  ;;  %2757 = vmatprep.subr.bf16.mxu1 %v3377_v12  ;;  %2741 = vmatprep.subr.bf16.mxu0 %v3374_v6 }
 0x48c   :  { %2759 = vmatpush1.bf16.msra.mxu1 %v3384_v17  ;;  %2743 = vmatpush1.bf16.msra.mxu0 %v3380_v16 }
 0x48d   :  { %2777 = vmatprep.subr.bf16.mxu0 %v3341_v33  ;;  %2761 = vmatprep.subr.bf16.mxu1 %v3481_v22 }
 0x493   :  { %v3101_v36 = vpop.eup %3100 }
 0x494   :  { %587 = vrot.lane.b32.xlu0 %v3101_v36, %s3260_s8  ;;  %v782_v36 = vld [vmem:[#allocation3 + $0x108] sm:$0xff] }
 0x552   :  { %v482_v43 = vpop.f32.mrb[2].mxu0 }
 0x553   :  { %v593_v45 = vadd.f32 %v482_v43, %v124_v41  ;;  %v484_v48 = vpop.f32.mrb[3].mxu0  ;;  %v3500_v41 = vpack.c.bf16 %v784_v39, %v782_v36  ;;  %v781_v43 = vld [vmem:[#allocation3 + $0x100] sm:$0xff] }
 0x554   :  { %v594_v49 = vadd.f32 %v484_v48, %v125_v44  ;;  %v783_v44 = vld [vmem:[#allocation3 + $0x138] sm:$0xff]  ;;  %v788_v48 = vld [vmem:[#allocation3 + $0x1b0] sm:$0xff] }
 0x555   :  { %v2561_v61 = vmul.f32 -1.442695, %v593_v45  ;;  %v786_v45 = vld [vmem:[#allocation3 + $0x178] sm:$0xff] }
 0x556   :  { %v2562_v52 = vmul.f32 -1.442695, %v594_v49  ;;  %v3506_v49 = vpack.c.bf16 %v783_v44, %v781_v43 }
 0x558   :  { %3102 = vpow2.f32 %v2562_v52  ;;  %v3509_v52 = vpack.c.bf16 %v788_v48, %v786_v45 }
 0x562   :  { %v3103_v53 = vpop.eup %3102 }
 0x563   :  { %v602_v54 = vadd.f32 1.0, %v3103_v53  ;;  %v785_v53 = vld [vmem:[#allocation3 + $0x170] sm:$0xff] }
 0x565   :  { %3104 = vrcp.f32 %v602_v54  ;;  %v787_v54 = vld [vmem:[#allocation3 + $0x1a8] sm:$0xff] }
 0x566   :  { %3106 = vpow2.f32 %v2561_v61 }
 0x56f   :  { %v3105_v57 = vpop.eup %3104 }
 0x570   :  { %v607_v58 = vmul.f32 2.0, %v3105_v57  ;;  %v3107_v62 = vpop.eup %3106 }
 0x571   :  { %v601_v63 = vadd.f32 1.0, %v3107_v62 }
 0x572   :  { %v2563_v59 = vadd.f32 -1.0, %v607_v58  ;;  %v588_v58 = vpop.permute.xlu0 %587 }
 0x573   :  { %3108 = vrcp.f32 %v601_v63 }
 0x574   :  { %611 = vrot.lane.b32.xlu1 %v2563_v59, %s3260_s8  ;;  %v590_v59 = vmul.f32 %v3431_v3, %v588_v58 }
 0x57d   :  { %v3109_v1 = vpop.eup %3108 }
 0x57e   :  { %v609_v9 = vmul.f32 %v3109_v1, %v3444_v25  ;;  %v773_v25 = vld [vmem:[#allocation3 + $0x20] sm:$0xff] }
 0x57f   :  { %v3489_v31 = vpack.c.bf16 %v775_v15, %v773_v25 }
 0x5e6   :  { %v612_v2 = vpop.permute.xlu1 %611 }
 0x5e7   :  { %v614_v4 = vmul.f32 %v3109_v1, %v612_v2 }
 0x5e9   :  { %616 = vrot.lane.b32.xlu1 %v614_v4, %s3260_s8 }
 0x65b   :  { %v617_v10 = vpop.permute.xlu1 %616 }
 0x65c   :  { %v3479_v18 = vadd.f32 %v617_v10, %v609_v9 }
 0x65e   :  { %3110 = vtanh.f32 %v3479_v18 }
 0x668   :  { %v3111_v26 = vpop.eup %3110 }
 0x669   :  { %622 = vrot.lane.b32.xlu1 %v3111_v26, %s3260_s8 }
 0x66d   :  { %57 = vperm.xlu1 %3071, %v34_v28  }
 0x6db   :  { %v623_v29 = vpop.permute.xlu1 %622 }
 0x6dc   :  { %v625_v30 = vmul.f32 %v3105_v57, %v623_v29  ;;  %v3514_v57 = vpack.c.bf16 %v787_v54, %v785_v53 }
 0x6de   :  { %2564 = vmatmul.mubr.msk.f32.vlgmr.msra.gmra.mrb[4].mxu0 %vm219_vm0, %v625_v30  ;;  %2565 = vmatmul.mubr.msk.f32.vlgmr.msra.gmra.mrb[4].mxu1 %vm219_vm0, %v625_v30 }
 0x6df   :  { %2763 = vmatpush1.bf16.msra.mxu1 %v3489_v31  ;;  %856 = vmatprep.mubr.f32.mxu1 %v3261_v24 }
 0x6e0   :  { %2765 = vmatprep.subr.bf16.mxu1 %v3491_v32  ;;  %2779 = vmatpush1.bf16.msra.mxu0 %v3345_v38 }
 0x6e1   :  { %2781 = vmatprep.subr.bf16.mxu0 %v3352_v46  ;;  %998 = vmatprep.mubr.f32.mxu0 %v3261_v24 }
 0x6e3   :  { %2767 = vmatpush1.bf16.msra.mxu1 %v3496_v40 }
 0x6e4   :  { %2769 = vmatprep.subr.bf16.mxu1 %v3500_v41  ;;  %2783 = vmatpush1.bf16.msra.mxu0 %v3357_v51 }
 0x6e5   :  { %2785 = vmatprep.subr.bf16.mxu0 %v3363_v56 }
 0x6e7   :  { %2771 = vmatpush1.bf16.msra.mxu1 %v3506_v49 }
 0x6e8   :  { %2773 = vmatprep.subr.bf16.mxu1 %v3509_v52  ;;  %2787 = vmatpush1.bf16.msra.mxu0 %v3368_v0 }
 0x6e9   :  { %2789 = vmatprep.subr.bf16.mxu0 %v3374_v6 }
 0x6eb   :  { %2775 = vmatpush1.bf16.msra.mxu1 %v3514_v57 }
 0x6ec   :  { %2791 = vmatpush1.bf16.msra.mxu0 %v3380_v16  ;;  %2809 = vmatprep.subr.bf16.mxu1 %v3481_v22  ;;  %v58_v3 = vpop.permute.xlu1 %57 }
 0x6ed   :  { %2793 = vmatprep.subr.bf16.mxu0 %v3343_v37  ;;  %v98_v61 = vmul.f32 %v3313_v7, %v58_v3  ;;  %v97_v36 = vmul.f32 %v3330_v20, %v58_v3 }
 0x6ee   :  { %2566 = vmatmul.mubr.msk.f32.vlgmr.msra.gmra.mrb[2].mxu1 %vm219_vm0, %v590_v59 }
 0x6ef   :  { %2811 = vmatpush1.bf16.msra.mxu1 %v3489_v31  ;;  %1145 = vmatprep.mubr.f32.mxu1 %v3261_v24  ;;  %v127_v62 = vadd.f32 %v3316_v8, %v98_v61  ;;  %v126_v39 = vadd.f32 %v3333_v21, %v97_v36 }
 0x6f0   :  { %2813 = vmatprep.subr.bf16.mxu1 %v3491_v32 }
 0x6f3   :  { %2815 = vmatpush1.bf16.msra.mxu1 %v3496_v40 }
 0x6f4   :  { %2817 = vmatprep.subr.bf16.mxu1 %v3500_v41 }
 0x6f7   :  { %2819 = vmatpush1.bf16.msra.mxu1 %v3506_v49 }
 0x6f8   :  { %2821 = vmatprep.subr.bf16.mxu1 %v3509_v52 }
 0x6fb   :  { %2823 = vmatpush1.bf16.msra.mxu1 %v3514_v57 }
 0x6fc   :  { %2841 = vmatprep.subr.bf16.mxu1 %v3343_v37 }
 0x7b1   :  { %v695_v63 = vpop.f32.mrb[4].mxu0 }
 0x7b2   :  { %v697_v1 = vpop.f32.mrb[5].mxu0  ;;  %v898_v43 = vadd.f32 %v695_v63, %v126_v39 }
 0x7b3   :  { %v899_v2 = vadd.f32 %v697_v1, %v127_v62 }
 0x7b4   :  { %v2570_v44 = vmul.f32 -1.442695, %v898_v43 }
 0x7b5   :  { %v2571_v4 = vmul.f32 -1.442695, %v899_v2 }
 0x7b7   :  { %3112 = vpow2.f32 %v2571_v4 }
 0x7c1   :  { %v3113_v9 = vpop.eup %3112  ;;  %v858_v10 = vpop.f32.mrb[2].mxu1 }
 0x7c2   :  { %v907_v13 = vadd.f32 1.0, %v3113_v9  ;;  %v860_v14 = vpop.f32.mrb[3].mxu1  ;;  %v3034_v45 = vadd.f32 %v858_v10, %v3440_v11 }
 0x7c3   :  { %v3035_v26 = vadd.f32 %v860_v14, %v3428_v50 }
 0x7c4   :  { %3114 = vrcp.f32 %v907_v13  ;;  %v2567_v53 = vmul.f32 -1.442695, %v3034_v45 }
 0x7c5   :  { %v2568_v28 = vmul.f32 -1.442695, %v3035_v26  ;;  %v35_v26 = vld [vmem:[%s3804_s0 + $0x20] sm:$0xff] }
 0x7c7   :  { %3116 = vpow2.f32 %v2568_v28 }
 0x7ce   :  { %v3115_v25 = vpop.eup %3114 }
 0x7cf   :  { %v912_v15 = vmul.f32 2.0, %v3115_v25 }
 0x7d1   :  { %v3117_v27 = vpop.eup %3116  ;;  %v2572_v19 = vadd.f32 -1.0, %v912_v15 }
 0x7d2   :  { %v872_v29 = vadd.f32 1.0, %v3117_v27 }
 0x7d3   :  { %916 = vrot.lane.b32.xlu0 %v2572_v19, %s3260_s8 }
 0x7d4   :  { %3118 = vrcp.f32 %v872_v29 }
 0x7d5   :  { %3120 = vpow2.f32 %v2570_v44 }
 0x7d6   :  { %3122 = vpow2.f32 %v2567_v53 }
 0x7de   :  { %v3119_v30 = vpop.eup %3118 }
 0x7df   :  { %v877_v23 = vmul.f32 2.0, %v3119_v30  ;;  %v3121_v48 = vpop.eup %3120 }
 0x7e0   :  { %v906_v54 = vadd.f32 1.0, %v3121_v48  ;;  %v3123_v58 = vpop.eup %3122 }
 0x7e1   :  { %v2569_v34 = vadd.f32 -1.0, %v877_v23  ;;  %v871_v1 = vadd.f32 1.0, %v3123_v58 }
 0x7e2   :  { %3124 = vrcp.f32 %v906_v54 }
 0x7e3   :  { %881 = vrot.lane.b32.xlu1 %v2569_v34, %s3260_s8  ;;  %3126 = vrcp.f32 %v871_v1 }
 0x7ec   :  { %v3125_v59 = vpop.eup %3124 }
 0x7ed   :  { %v3127_v3 = vpop.eup %3126  ;;  %v914_v4 = vmul.f32 %v3125_v59, %v3479_v18 }
 0x7ee   :  { %v879_v14 = vmul.f32 %v3127_v3, %v3461_v35 }
 0x845   :  { %v917_v61 = vpop.permute.xlu0 %916 }
 0x846   :  { %v919_v62 = vmul.f32 %v3125_v59, %v917_v61 }
 0x848   :  { %921 = vrot.lane.b32.xlu0 %v919_v62, %s3260_s8 }
 0x855   :  { %v882_v2 = vpop.permute.xlu1 %881 }
 0x856   :  { %v884_v63 = vmul.f32 %v3127_v3, %v882_v2 }
 0x858   :  { %886 = vrot.lane.b32.xlu1 %v884_v63, %s3260_s8 }
 0x8ba   :  { %v922_v9 = vpop.permute.xlu0 %921 }
 0x8bb   :  { %v3545_v10 = vadd.f32 %v922_v9, %v914_v4 }
 0x8bd   :  { %3128 = vtanh.f32 %v3545_v10 }
 0x8c7   :  { %v3129_v13 = vpop.eup %3128 }
 0x8c8   :  { %927 = vrot.lane.b32.xlu0 %v3129_v13, %s3260_s8 }
 0x8ca   :  { %v887_v28 = vpop.permute.xlu1 %886 }
 0x8cb   :  { %v3553_v15 = vadd.f32 %v887_v28, %v879_v14 }
 0x8cc   :  { %62 = vperm.xlu0 %3070, %v35_v26  }
 0x8cd   :  { %3130 = vtanh.f32 %v3553_v15 }
 0x8d7   :  { %v3131_v18 = vpop.eup %3130 }
 0x8d8   :  { %892 = vrot.lane.b32.xlu1 %v3131_v18, %s3260_s8 }
 0x93a   :  { %v928_v27 = vpop.permute.xlu0 %927 }
 0x93b   :  { %v930_v19 = vmul.f32 %v3115_v25, %v928_v27 }
 0x93d   :  { %2573 = vmatmul.mubr.msk.f32.vlgmr.msra.gmra.mrb[6].mxu0 %vm219_vm0, %v930_v19 }
 0x93e   :  { %2795 = vmatpush1.bf16.msra.mxu0 %v3348_v42  ;;  %1069 = vmatprep.mubr.f32.mxu0 %v3261_v24 }
 0x93f   :  { %2797 = vmatprep.subr.bf16.mxu0 %v3354_v47 }
 0x942   :  { %2799 = vmatpush1.bf16.msra.mxu0 %v3361_v55 }
 0x943   :  { %2801 = vmatprep.subr.bf16.mxu0 %v3365_v60 }
 0x946   :  { %2803 = vmatpush1.bf16.msra.mxu0 %v3372_v5 }
 0x947   :  { %2805 = vmatprep.subr.bf16.mxu0 %v3377_v12 }
 0x94a   :  { %v893_v35 = vpop.permute.xlu1 %892  ;;  %2807 = vmatpush1.bf16.msra.mxu0 %v3384_v17 }
 0x94b   :  { %v895_v25 = vmul.f32 %v3119_v30, %v893_v35  ;;  %2825 = vmatprep.subr.bf16.mxu0 %v3341_v33  ;;  %v63_v29 = vpop.permute.xlu0 %62 }
 0x94c   :  { %v100_v30 = vmul.f32 %v3313_v7, %v63_v29  ;;  %v99_v9 = vmul.f32 %v3330_v20, %v63_v29 }
 0x94d   :  { %2574 = vmatmul.mubr.msk.f32.vlgmr.msra.gmra.mrb[8].mxu0 %vm219_vm0, %v930_v19  ;;  %2575 = vmatmul.mubr.msk.f32.vlgmr.msra.gmra.mrb[4].mxu1 %vm219_vm0, %v895_v25 }
 0x94e   :  { %2827 = vmatpush1.bf16.msra.mxu0 %v3345_v38  ;;  %2843 = vmatpush1.bf16.msra.mxu1 %v3348_v42  ;;  %v129_v34 = vadd.f32 %v3316_v8, %v100_v30  ;;  %v128_v13 = vadd.f32 %v3333_v21, %v99_v9 }
 0x94f   :  { %2829 = vmatprep.subr.bf16.mxu0 %v3352_v46  ;;  %2845 = vmatprep.subr.bf16.mxu1 %v3354_v47 }
 0x950   :  { %1287 = vmatprep.mubr.f32.mxu0 %v3261_v24  ;;  %1358 = vmatprep.mubr.f32.mxu1 %v3261_v24 }
 0x952   :  { %2831 = vmatpush1.bf16.msra.mxu0 %v3357_v51  ;;  %2847 = vmatpush1.bf16.msra.mxu1 %v3361_v55 }
 0x953   :  { %2833 = vmatprep.subr.bf16.mxu0 %v3363_v56  ;;  %2849 = vmatprep.subr.bf16.mxu1 %v3365_v60 }
 0x956   :  { %2835 = vmatpush1.bf16.msra.mxu0 %v3368_v0  ;;  %2851 = vmatpush1.bf16.msra.mxu1 %v3372_v5 }
 0x957   :  { %2837 = vmatprep.subr.bf16.mxu0 %v3374_v6  ;;  %2853 = vmatprep.subr.bf16.mxu1 %v3377_v12 }
 0x95a   :  { %2839 = vmatpush1.bf16.msra.mxu0 %v3380_v16  ;;  %2855 = vmatpush1.bf16.msra.mxu1 %v3384_v17 }
 0x95b   :  { %2857 = vmatprep.subr.bf16.mxu0 %v3481_v22  ;;  %2873 = vmatprep.subr.bf16.mxu1 %v3341_v33 }
 0xa10   :  { %v1000_v23 = vpop.f32.mrb[6].mxu0 }
 0xa11   :  { %v1002_v36 = vpop.f32.mrb[7].mxu0  ;;  %v1187_v14 = vadd.f32 %v1000_v23, %v128_v13 }
 0xa12   :  { %v1188_v39 = vadd.f32 %v1002_v36, %v129_v34 }
 0xa13   :  { %v2579_v26 = vmul.f32 -1.442695, %v1187_v14 }
 0xa14   :  { %v2580_v43 = vmul.f32 -1.442695, %v1188_v39 }
 0xa16   :  { %3132 = vpow2.f32 %v2580_v43 }
 0xa20   :  { %v3133_v44 = vpop.eup %3132  ;;  %v1147_v45 = vpop.f32.mrb[4].mxu1 }
 0xa21   :  { %v1196_v48 = vadd.f32 1.0, %v3133_v44  ;;  %v1149_v53 = vpop.f32.mrb[5].mxu1  ;;  %v3036_v28 = vadd.f32 %v1147_v45, %v3440_v11 }
 0xa22   :  { %v3037_v54 = vadd.f32 %v1149_v53, %v3428_v50 }
 0xa23   :  { %3134 = vrcp.f32 %v1196_v48  ;;  %v2576_v27 = vmul.f32 -1.442695, %v3036_v28 }
 0xa24   :  { %v2577_v58 = vmul.f32 -1.442695, %v3037_v54  ;;  %v36_v54 = vld [vmem:[%s3804_s0 + $0x28] sm:$0xff] }
 0xa26   :  { %3136 = vpow2.f32 %v2577_v58 }
 0xa2d   :  { %v3135_v59 = vpop.eup %3134 }
 0xa2e   :  { %v1201_v61 = vmul.f32 2.0, %v3135_v59 }
 0xa30   :  { %v3137_v62 = vpop.eup %3136  ;;  %v2581_v1 = vadd.f32 -1.0, %v1201_v61 }
 0xa31   :  { %v1161_v3 = vadd.f32 1.0, %v3137_v62 }
 0xa32   :  { %1205 = vrot.lane.b32.xlu1 %v2581_v1, %s3260_s8 }
 0xa33   :  { %3138 = vrcp.f32 %v1161_v3 }
 0xa34   :  { %3140 = vpow2.f32 %v2579_v26 }
 0xa35   :  { %3142 = vpow2.f32 %v2576_v27 }
 0xa3d   :  { %v3139_v2 = vpop.eup %3138 }
 0xa3e   :  { %v1166_v63 = vmul.f32 2.0, %v3139_v2  ;;  %v3141_v18 = vpop.eup %3140 }
 0xa3f   :  { %v1195_v19 = vadd.f32 1.0, %v3141_v18  ;;  %v3143_v35 = vpop.eup %3142 }
 0xa40   :  { %v2578_v4 = vadd.f32 -1.0, %v1166_v63  ;;  %v1160_v36 = vadd.f32 1.0, %v3143_v35 }
 0xa41   :  { %3144 = vrcp.f32 %v1195_v19 }
 0xa42   :  { %1170 = vrot.lane.b32.xlu0 %v2578_v4, %s3260_s8  ;;  %3146 = vrcp.f32 %v1160_v36 }
 0xa4b   :  { %v3145_v25 = vpop.eup %3144 }
 0xa4c   :  { %v3147_v29 = vpop.eup %3146  ;;  %v1203_v43 = vmul.f32 %v3145_v25, %v3545_v10 }
 0xa4d   :  { %v1168_v53 = vmul.f32 %v3147_v29, %v3553_v15 }
 0xaa4   :  { %v1206_v30 = vpop.permute.xlu1 %1205 }
 0xaa5   :  { %v1208_v34 = vmul.f32 %v3145_v25, %v1206_v30 }
 0xaa7   :  { %1210 = vrot.lane.b32.xlu1 %v1208_v34, %s3260_s8 }
 0xab4   :  { %v1171_v39 = vpop.permute.xlu0 %1170 }
 0xab5   :  { %v1173_v23 = vmul.f32 %v3147_v29, %v1171_v39 }
 0xab7   :  { %1175 = vrot.lane.b32.xlu0 %v1173_v23, %s3260_s8 }
 0xb19   :  { %v1211_v44 = vpop.permute.xlu1 %1210 }
 0xb1a   :  { %v3598_v45 = vadd.f32 %v1211_v44, %v1203_v43 }
 0xb1c   :  { %3148 = vtanh.f32 %v3598_v45 }
 0xb26   :  { %v3149_v48 = vpop.eup %3148 }
 0xb27   :  { %1216 = vrot.lane.b32.xlu1 %v3149_v48, %s3260_s8 }
 0xb29   :  { %v1176_v58 = vpop.permute.xlu0 %1175 }
 0xb2a   :  { %v3606_v61 = vadd.f32 %v1176_v58, %v1168_v53 }
 0xb2b   :  { %67 = vperm.xlu1 %3071, %v36_v54  }
 0xb2c   :  { %3150 = vtanh.f32 %v3606_v61 }
 0xb36   :  { %v3151_v10 = vpop.eup %3150 }
 0xb37   :  { %1181 = vrot.lane.b32.xlu0 %v3151_v10, %s3260_s8 }
 0xb99   :  { %v1217_v62 = vpop.permute.xlu1 %1216 }
 0xb9a   :  { %v1219_v1 = vmul.f32 %v3135_v59, %v1217_v62 }
 0xb9c   :  { %2582 = vmatmul.mubr.msk.f32.vlgmr.msra.gmra.mrb[10].mxu0 %vm219_vm0, %v1219_v1  ;;  %2583 = vmatmul.mubr.msk.f32.vlgmr.msra.gmra.mrb[6].mxu1 %vm219_vm0, %v1219_v1 }
 0xb9d   :  { %2859 = vmatpush1.bf16.msra.mxu0 %v3489_v31  ;;  %1434 = vmatprep.mubr.f32.mxu0 %v3261_v24 }
 0xb9e   :  { %2861 = vmatprep.subr.bf16.mxu0 %v3491_v32  ;;  %2875 = vmatpush1.bf16.msra.mxu1 %v3345_v38 }
 0xb9f   :  { %2877 = vmatprep.subr.bf16.mxu1 %v3352_v46  ;;  %1576 = vmatprep.mubr.f32.mxu1 %v3261_v24 }
 0xba1   :  { %2863 = vmatpush1.bf16.msra.mxu0 %v3496_v40 }
 0xba2   :  { %2865 = vmatprep.subr.bf16.mxu0 %v3500_v41  ;;  %2879 = vmatpush1.bf16.msra.mxu1 %v3357_v51 }
 0xba3   :  { %2881 = vmatprep.subr.bf16.mxu1 %v3363_v56 }
 0xba5   :  { %2867 = vmatpush1.bf16.msra.mxu0 %v3506_v49 }
 0xba6   :  { %2869 = vmatprep.subr.bf16.mxu0 %v3509_v52  ;;  %2883 = vmatpush1.bf16.msra.mxu1 %v3368_v0 }
 0xba7   :  { %2885 = vmatprep.subr.bf16.mxu1 %v3374_v6 }
 0xba9   :  { %2871 = vmatpush1.bf16.msra.mxu0 %v3514_v57  ;;  %v1182_v15 = vpop.permute.xlu0 %1181 }
 0xbaa   :  { %v1184_v59 = vmul.f32 %v3139_v2, %v1182_v15  ;;  %2889 = vmatprep.subr.bf16.mxu0 %v3343_v37  ;;  %2887 = vmatpush1.bf16.msra.mxu1 %v3380_v16  ;;  %v68_v3 = vpop.permute.xlu1 %67 }
 0xbab   :  { %2905 = vmatprep.subr.bf16.mxu1 %v3481_v22  ;;  %v102_v2 = vmul.f32 %v3313_v7, %v68_v3  ;;  %v101_v43 = vmul.f32 %v3330_v20, %v68_v3 }
 0xbac   :  { %2584 = vmatmul.mubr.msk.f32.vlgmr.msra.gmra.mrb[8].mxu0 %vm219_vm0, %v1184_v59 }
 0xbad   :  { %2891 = vmatpush1.bf16.msra.mxu0 %v3348_v42  ;;  %1647 = vmatprep.mubr.f32.mxu0 %v3261_v24  ;;  %v131_v4 = vadd.f32 %v3316_v8, %v102_v2  ;;  %v130_v44 = vadd.f32 %v3333_v21, %v101_v43 }
 0xbae   :  { %2893 = vmatprep.subr.bf16.mxu0 %v3354_v47 }
 0xbb1   :  { %2895 = vmatpush1.bf16.msra.mxu0 %v3361_v55 }
 0xbb2   :  { %2897 = vmatprep.subr.bf16.mxu0 %v3365_v60 }
 0xbb5   :  { %2899 = vmatpush1.bf16.msra.mxu0 %v3372_v5 }
 0xbb6   :  { %2901 = vmatprep.subr.bf16.mxu0 %v3377_v12 }
 0xbb9   :  { %2903 = vmatpush1.bf16.msra.mxu0 %v3384_v17 }
 0xbba   :  { %2921 = vmatprep.subr.bf16.mxu0 %v3341_v33 }
 0xc6f   :  { %v1289_v63 = vpop.f32.mrb[10].mxu0 }
 0xc70   :  { %v1291_v9 = vpop.f32.mrb[11].mxu0  ;;  %v1476_v48 = vadd.f32 %v1289_v63, %v130_v44 }
 0xc71   :  { %v1477_v13 = vadd.f32 %v1291_v9, %v131_v4 }
 0xc72   :  { %v2588_v53 = vmul.f32 -1.442695, %v1476_v48 }
 0xc73   :  { %v2589_v14 = vmul.f32 -1.442695, %v1477_v13 }
 0xc75   :  { %3152 = vpow2.f32 %v2589_v14 }
 0xc7f   :  { %v3153_v26 = vpop.eup %3152  ;;  %v1436_v28 = vpop.f32.mrb[8].mxu0 }
 0xc80   :  { %v1485_v18 = vadd.f32 1.0, %v3153_v26  ;;  %v1438_v27 = vpop.f32.mrb[9].mxu0  ;;  %v3038_v54 = vadd.f32 %v1436_v28, %v3440_v11 }
 0xc81   :  { %v3039_v19 = vadd.f32 %v1438_v27, %v3428_v50  ;;  %v37_v27 = vld [vmem:[%s3804_s0 + $0x30] sm:$0xff] }
 0xc82   :  { %3154 = vrcp.f32 %v1485_v18  ;;  %v2585_v10 = vmul.f32 -1.442695, %v3038_v54 }
 0xc83   :  { %v2586_v35 = vmul.f32 -1.442695, %v3039_v19 }
 0xc85   :  { %3156 = vpow2.f32 %v2586_v35 }
 0xc8c   :  { %v3155_v33 = vpop.eup %3154 }
 0xc8d   :  { %v1490_v25 = vmul.f32 2.0, %v3155_v33 }
 0xc8f   :  { %v3157_v30 = vpop.eup %3156  ;;  %v2590_v34 = vadd.f32 -1.0, %v1490_v25 }
 0xc90   :  { %v1450_v36 = vadd.f32 1.0, %v3157_v30 }
 0xc91   :  { %1494 = vrot.lane.b32.xlu0 %v2590_v34, %s3260_s8 }
 0xc92   :  { %3158 = vrcp.f32 %v1450_v36 }
 0xc93   :  { %3160 = vpow2.f32 %v2588_v53 }
 0xc94   :  { %3162 = vpow2.f32 %v2585_v10 }
 0xc9c   :  { %v3159_v29 = vpop.eup %3158 }
 0xc9d   :  { %v1455_v39 = vmul.f32 2.0, %v3159_v29  ;;  %v3161_v58 = vpop.eup %3160 }
 0xc9e   :  { %v1484_v62 = vadd.f32 1.0, %v3161_v58  ;;  %v3163_v1 = vpop.eup %3162 }
 0xc9f   :  { %v2587_v23 = vadd.f32 -1.0, %v1455_v39  ;;  %v1449_v4 = vadd.f32 1.0, %v3163_v1 }
 0xca0   :  { %3164 = vrcp.f32 %v1484_v62 }
 0xca1   :  { %1459 = vrot.lane.b32.xlu1 %v2587_v23, %s3260_s8  ;;  %3166 = vrcp.f32 %v1449_v4 }
 0xcaa   :  { %v3165_v15 = vpop.eup %3164 }
 0xcab   :  { %v3167_v3 = vpop.eup %3166  ;;  %v1492_v13 = vmul.f32 %v3165_v15, %v3598_v45 }
 0xcac   :  { %v1457_v18 = vmul.f32 %v3167_v3, %v3606_v61 }
 0xd03   :  { %v1495_v59 = vpop.permute.xlu0 %1494 }
 0xd04   :  { %v1497_v2 = vmul.f32 %v3165_v15, %v1495_v59 }
 0xd06   :  { %1499 = vrot.lane.b32.xlu0 %v1497_v2, %s3260_s8 }
 0xd13   :  { %v1460_v9 = vpop.permute.xlu1 %1459 }
 0xd14   :  { %v1462_v63 = vmul.f32 %v3167_v3, %v1460_v9 }
 0xd16   :  { %1464 = vrot.lane.b32.xlu1 %v1462_v63, %s3260_s8 }
 0xd78   :  { %v1500_v14 = vpop.permute.xlu0 %1499 }
 0xd79   :  { %v3651_v26 = vadd.f32 %v1500_v14, %v1492_v13 }
 0xd7b   :  { %3168 = vtanh.f32 %v3651_v26 }
 0xd85   :  { %v3169_v28 = vpop.eup %3168 }
 0xd86   :  { %1505 = vrot.lane.b32.xlu0 %v3169_v28, %s3260_s8 }
 0xd88   :  { %v1465_v19 = vpop.permute.xlu1 %1464 }
 0xd89   :  { %v3659_v35 = vadd.f32 %v1465_v19, %v1457_v18 }
 0xd8a   :  { %72 = vperm.xlu0 %3070, %v37_v27  }
 0xd8b   :  { %3170 = vtanh.f32 %v3659_v35 }
 0xd95   :  { %v3171_v45 = vpop.eup %3170 }
 0xd96   :  { %1470 = vrot.lane.b32.xlu1 %v3171_v45, %s3260_s8 }
 0xdf8   :  { %v1506_v25 = vpop.permute.xlu0 %1505 }
 0xdf9   :  { %v1508_v30 = vmul.f32 %v3155_v33, %v1506_v25 }
 0xdfb   :  { %2591 = vmatmul.mubr.msk.f32.vlgmr.msra.gmra.mrb[8].mxu1 %vm219_vm0, %v1508_v30  ;;  %2592 = vmatmul.mubr.msk.f32.vlgmr.msra.gmra.mrb[12].mxu0 %vm219_vm0, %v1508_v30 }
 0xdfc   :  { %2907 = vmatpush1.bf16.msra.mxu1 %v3489_v31  ;;  %1723 = vmatprep.mubr.f32.mxu1 %v3261_v24 }
 0xdfd   :  { %2909 = vmatprep.subr.bf16.mxu1 %v3491_v32  ;;  %2923 = vmatpush1.bf16.msra.mxu0 %v3345_v38 }
 0xdfe   :  { %2925 = vmatprep.subr.bf16.mxu0 %v3352_v46  ;;  %1865 = vmatprep.mubr.f32.mxu0 %v3261_v24 }
 0xe00   :  { %2911 = vmatpush1.bf16.msra.mxu1 %v3496_v40 }
 0xe01   :  { %2913 = vmatprep.subr.bf16.mxu1 %v3500_v41  ;;  %2927 = vmatpush1.bf16.msra.mxu0 %v3357_v51 }
 0xe02   :  { %2929 = vmatprep.subr.bf16.mxu0 %v3363_v56 }
 0xe04   :  { %2915 = vmatpush1.bf16.msra.mxu1 %v3506_v49 }
 0xe05   :  { %2917 = vmatprep.subr.bf16.mxu1 %v3509_v52  ;;  %2931 = vmatpush1.bf16.msra.mxu0 %v3368_v0 }
 0xe06   :  { %2933 = vmatprep.subr.bf16.mxu0 %v3374_v6 }
 0xe08   :  { %v1471_v38 = vpop.permute.xlu1 %1470  ;;  %2919 = vmatpush1.bf16.msra.mxu1 %v3514_v57 }
 0xe09   :  { %v1473_v46 = vmul.f32 %v3159_v29, %v1471_v38  ;;  %2937 = vmatprep.subr.bf16.mxu1 %v3343_v37  ;;  %2935 = vmatpush1.bf16.msra.mxu0 %v3380_v16  ;;  %v73_v51 = vpop.permute.xlu0 %72 }
 0xe0a   :  { %2953 = vmatprep.subr.bf16.mxu0 %v3481_v22  ;;  %v104_v56 = vmul.f32 %v3313_v7, %v73_v51  ;;  %v103_v1 = vmul.f32 %v3330_v20, %v73_v51 }
 0xe0b   :  { %2593 = vmatmul.mubr.msk.f32.vlgmr.msra.gmra.mrb[6].mxu1 %vm219_vm0, %v1473_v46 }
 0xe0c   :  { %2939 = vmatpush1.bf16.msra.mxu1 %v3348_v42  ;;  %1936 = vmatprep.mubr.f32.mxu1 %v3261_v24  ;;  %v133_v6 = vadd.f32 %v3316_v8, %v104_v56  ;;  %v132_v15 = vadd.f32 %v3333_v21, %v103_v1 }
 0xe0d   :  { %2941 = vmatprep.subr.bf16.mxu1 %v3354_v47 }
 0xe10   :  { %2943 = vmatpush1.bf16.msra.mxu1 %v3361_v55 }
 0xe11   :  { %2945 = vmatprep.subr.bf16.mxu1 %v3365_v60 }
 0xe14   :  { %2947 = vmatpush1.bf16.msra.mxu1 %v3372_v5 }
 0xe15   :  { %2949 = vmatprep.subr.bf16.mxu1 %v3377_v12 }
 0xe18   :  { %2951 = vmatpush1.bf16.msra.mxu1 %v3384_v17 }
 0xe19   :  { %2969 = vmatprep.subr.bf16.mxu1 %v3343_v37 }
 0xece   :  { %v1578_v0 = vpop.f32.mrb[8].mxu1 }
 0xecf   :  { %v1580_v16 = vpop.f32.mrb[9].mxu1  ;;  %v1765_v59 = vadd.f32 %v1578_v0, %v132_v15  ;;  %v38_v0 = vld [vmem:[%s3804_s0 + $0x38] sm:$0xff] }
 0xed0   :  { %v1766_v61 = vadd.f32 %v1580_v16, %v133_v6 }
 0xed1   :  { %v2597_v2 = vmul.f32 -1.442695, %v1765_v59 }
 0xed2   :  { %v2598_v33 = vmul.f32 -1.442695, %v1766_v61 }
 0xed4   :  { %3172 = vpow2.f32 %v2598_v33 }
 0xede   :  { %v3173_v34 = vpop.eup %3172  ;;  %v1725_v36 = vpop.f32.mrb[6].mxu1 }
 0xedf   :  { %v1774_v29 = vadd.f32 1.0, %v3173_v34  ;;  %v1727_v39 = vpop.f32.mrb[7].mxu1  ;;  %v3040_v4 = vadd.f32 %v1725_v36, %v3440_v11 }
 0xee0   :  { %v3041_v23 = vadd.f32 %v1727_v39, %v3428_v50 }
 0xee1   :  { %3174 = vrcp.f32 %v1774_v29  ;;  %v2594_v9 = vmul.f32 -1.442695, %v3040_v4 }
 0xee2   :  { %v2595_v43 = vmul.f32 -1.442695, %v3041_v23 }
 0xee4   :  { %3176 = vpow2.f32 %v2595_v43 }
 0xeeb   :  { %v3175_v37 = vpop.eup %3174 }
 0xeec   :  { %v1779_v44 = vmul.f32 2.0, %v3175_v37 }
 0xeee   :  { %v3177_v48 = vpop.eup %3176  ;;  %v2599_v53 = vadd.f32 -1.0, %v1779_v44 }
 0xeef   :  { %v1739_v54 = vadd.f32 1.0, %v3177_v48 }
 0xef0   :  { %1783 = vrot.lane.b32.xlu1 %v2599_v53, %s3260_s8 }
 0xef1   :  { %3178 = vrcp.f32 %v1739_v54 }
 0xef2   :  { %3180 = vpow2.f32 %v2597_v2 }
 0xef3   :  { %3182 = vpow2.f32 %v2594_v9 }
 0xefb   :  { %v3179_v58 = vpop.eup %3178 }
 0xefc   :  { %v1744_v10 = vmul.f32 2.0, %v3179_v58  ;;  %v3181_v3 = vpop.eup %3180 }
 0xefd   :  { %v1773_v63 = vadd.f32 1.0, %v3181_v3  ;;  %v3183_v13 = vpop.eup %3182 }
 0xefe   :  { %v2596_v62 = vadd.f32 -1.0, %v1744_v10  ;;  %v1738_v27 = vadd.f32 1.0, %v3183_v13 }
 0xeff   :  { %3184 = vrcp.f32 %v1773_v63 }
 0xf00   :  { %1748 = vrot.lane.b32.xlu0 %v2596_v62, %s3260_s8  ;;  %3186 = vrcp.f32 %v1738_v27 }
 0xf09   :  { %v3185_v14 = vpop.eup %3184 }
 0xf0a   :  { %v3187_v19 = vpop.eup %3186  ;;  %v1781_v30 = vmul.f32 %v3185_v14, %v3651_v26 }
 0xf0b   :  { %v1746_v56 = vmul.f32 %v3187_v19, %v3659_v35 }
 0xf62   :  { %v1784_v28 = vpop.permute.xlu1 %1783 }
 0xf63   :  { %v1786_v18 = vmul.f32 %v3185_v14, %v1784_v28 }
 0xf65   :  { %1788 = vrot.lane.b32.xlu1 %v1786_v18, %s3260_s8 }
 0xf72   :  { %v1749_v45 = vpop.permute.xlu0 %1748 }
 0xf73   :  { %v1751_v25 = vmul.f32 %v3187_v19, %v1749_v45 }
 0xf75   :  { %1753 = vrot.lane.b32.xlu0 %v1751_v25, %s3260_s8 }
 0xfd7   :  { %v1789_v38 = vpop.permute.xlu1 %1788 }
 0xfd8   :  { %v3704_v46 = vadd.f32 %v1789_v38, %v1781_v30 }
 0xfda   :  { %3188 = vtanh.f32 %v3704_v46 }
 0xfe4   :  { %v3189_v51 = vpop.eup %3188 }
 0xfe5   :  { %1794 = vrot.lane.b32.xlu1 %v3189_v51, %s3260_s8 }
 0xfe7   :  { %v1754_v6 = vpop.permute.xlu0 %1753 }
 0xfe8   :  { %v3712_v16 = vadd.f32 %v1754_v6, %v1746_v56 }
 0xfe9   :  { %77 = vperm.xlu1 %3071, %v38_v0  }
 0xfea   :  { %3190 = vtanh.f32 %v3712_v16 }
 0xff4   :  { %v3191_v26 = vpop.eup %3190 }
 0xff5   :  { %1759 = vrot.lane.b32.xlu0 %v3191_v26, %s3260_s8 }
0x1057   :  { %v1795_v61 = vpop.permute.xlu1 %1794 }
0x1058   :  { %v1797_v33 = vmul.f32 %v3175_v37, %v1795_v61 }
0x105a   :  { %2600 = vmatmul.mubr.msk.f32.vlgmr.msra.gmra.mrb[14].mxu0 %vm219_vm0, %v1797_v33  ;;  %2601 = vmatmul.mubr.msk.f32.vlgmr.msra.gmra.mrb[10].mxu1 %vm219_vm0, %v1797_v33 }
0x105b   :  { %2955 = vmatpush1.bf16.msra.mxu0 %v3489_v31  ;;  %2012 = vmatprep.mubr.f32.mxu0 %v3261_v24 }
0x105c   :  { %2957 = vmatprep.subr.bf16.mxu0 %v3491_v32  ;;  %2971 = vmatpush1.bf16.msra.mxu1 %v3348_v42 }
0x105d   :  { %2973 = vmatprep.subr.bf16.mxu1 %v3354_v47  ;;  %2154 = vmatprep.mubr.f32.mxu1 %v3261_v24 }
0x105f   :  { %2959 = vmatpush1.bf16.msra.mxu0 %v3496_v40 }
0x1060   :  { %2961 = vmatprep.subr.bf16.mxu0 %v3500_v41  ;;  %2975 = vmatpush1.bf16.msra.mxu1 %v3361_v55 }
0x1061   :  { %2977 = vmatprep.subr.bf16.mxu1 %v3365_v60 }
0x1063   :  { %2963 = vmatpush1.bf16.msra.mxu0 %v3506_v49 }
0x1064   :  { %2965 = vmatprep.subr.bf16.mxu0 %v3509_v52  ;;  %2979 = vmatpush1.bf16.msra.mxu1 %v3372_v5 }
0x1065   :  { %2981 = vmatprep.subr.bf16.mxu1 %v3377_v12 }
0x1067   :  { %2967 = vmatpush1.bf16.msra.mxu0 %v3514_v57  ;;  %v1760_v42 = vpop.permute.xlu0 %1759 }
0x1068   :  { %v1762_v47 = vmul.f32 %v3179_v58, %v1760_v42  ;;  %2983 = vmatpush1.bf16.msra.mxu1 %v3384_v17  ;;  %v78_v55 = vpop.permute.xlu1 %77 }
0x1069   :  { %2985 = vmatprep.subr.bf16.mxu1 %v3481_v22  ;;  %v106_v60 = vmul.f32 %v3313_v7, %v78_v55  ;;  %v105_v62 = vmul.f32 %v3330_v20, %v78_v55 }
0x106a   :  { %2602 = vmatmul.mubr.msk.f32.vlgmr.msra.gmra.mrb[12].mxu0 %vm219_vm0, %v1762_v47 }
0x106b   :  { %v135_v34 = vadd.f32 %v3316_v8, %v106_v60  ;;  %v134_v1 = vadd.f32 %v3333_v21, %v105_v62  ;;  %2650 = vmatprep.mubr.msk.f32.mxu0 %vm3263_vm1, %v3261_v24 }
0x112d   :  { %v1867_v35 = vpop.f32.mrb[14].mxu0 }
0x112e   :  { %v1869_v36 = vpop.f32.mrb[15].mxu0  ;;  %v2054_v15 = vadd.f32 %v1867_v35, %v134_v1 }
0x112f   :  { %v2055_v5 = vadd.f32 %v1869_v36, %v135_v34 }
0x1130   :  { %v2606_v59 = vmul.f32 -1.442695, %v2054_v15 }
0x1131   :  { %v2607_v29 = vmul.f32 -1.442695, %v2055_v5 }
0x1133   :  { %3192 = vpow2.f32 %v2607_v29 }
0x113d   :  { %v3193_v12 = vpop.eup %3192  ;;  %v2014_v39 = vpop.f32.mrb[12].mxu0 }
0x113e   :  { %v2063_v23 = vadd.f32 1.0, %v3193_v12  ;;  %v2016_v43 = vpop.f32.mrb[13].mxu0  ;;  %v3042_v2 = vadd.f32 %v2014_v39, %v3440_v11 }
0x113f   :  { %v3043_v17 = vadd.f32 %v2016_v43, %v3428_v50 }
0x1140   :  { %3194 = vrcp.f32 %v2063_v23  ;;  %v2603_v3 = vmul.f32 -1.442695, %v3042_v2  ;;  %v2377_v2 = vld [vmem:[#allocation3 + $0x30] sm:$0xff] }
0x1141   :  { %v2604_v37 = vmul.f32 -1.442695, %v3043_v17 }
0x1143   :  { %3196 = vpow2.f32 %v2604_v37 }
0x114a   :  { %v3195_v44 = vpop.eup %3194 }
0x114b   :  { %v2068_v48 = vmul.f32 2.0, %v3195_v44 }
0x114d   :  { %v3197_v53 = vpop.eup %3196  ;;  %v2608_v7 = vadd.f32 -1.0, %v2068_v48 }
0x114e   :  { %v2028_v54 = vadd.f32 1.0, %v3197_v53 }
0x114f   :  { %2072 = vrot.lane.b32.xlu0 %v2608_v7, %s3260_s8 }
0x1150   :  { %3198 = vrcp.f32 %v2028_v54 }
0x1151   :  { %3200 = vpow2.f32 %v2606_v59 }
0x1152   :  { %3202 = vpow2.f32 %v2603_v3  ;;  %v2379_v3 = vld [vmem:[#allocation3 + $0xa0] sm:$0xff] }
0x115a   :  { %v3199_v8 = vpop.eup %3198 }
0x115b   :  { %v2033_v58 = vmul.f32 2.0, %v3199_v8  ;;  %v3201_v4 = vpop.eup %3200 }
0x115c   :  { %v2062_v9 = vadd.f32 1.0, %v3201_v4  ;;  %v3203_v63 = vpop.eup %3202  ;;  %v2378_v4 = vld [vmem:[#allocation3 + $0x68] sm:$0xff] }
0x115d   :  { %v2605_v10 = vadd.f32 -1.0, %v2033_v58  ;;  %v2027_v18 = vadd.f32 1.0, %v3203_v63  ;;  %v3017_v63 = vpack.c.bf16 %v2378_v4, %v2377_v2 }
0x115e   :  { %3204 = vrcp.f32 %v2062_v9  ;;  %v3262_v9 = vmov 0.0|0.0  }
0x115f   :  { %2037 = vrot.lane.b32.xlu1 %v2605_v10, %s3260_s8  ;;  %3206 = vrcp.f32 %v2027_v18  ;;  %3016 = vmatprep.subr.bf16.mxu0 %v3262_v9 }
0x1160   :  { %3018 = vmatpush3.bf16.msra.mxu0 %v3017_v63 }
0x1161   :  { %3019 = vmatprep.subr.bf16.mxu0 %v3262_v9 }
0x1168   :  { %v3205_v13 = vpop.eup %3204 }
0x1169   :  { %v3207_v20 = vpop.eup %3206  ;;  %v2070_v19 = vmul.f32 %v3205_v13, %v3704_v46 }
0x116a   :  { %v2035_v38 = vmul.f32 %v3207_v20, %v3712_v16 }
0x11c1   :  { %v2073_v14 = vpop.permute.xlu0 %2072 }
0x11c2   :  { %v2075_v28 = vmul.f32 %v3205_v13, %v2073_v14  ;;  %v2380_v13 = vld [vmem:[#allocation3 + $0xd8] sm:$0xff] }
0x11c3   :  { %v3020_v14 = vpack.c.bf16 %v2380_v13, %v2379_v3 }
0x11c4   :  { %2077 = vrot.lane.b32.xlu0 %v2075_v28, %s3260_s8  ;;  %v2382_v28 = vld [vmem:[#allocation3 + $0x148] sm:$0xff] }
0x11c5   :  { %3021 = vmatpush3.bf16.msra.mxu0 %v3020_v14 }
0x11c6   :  { %3022 = vmatprep.subr.bf16.mxu0 %v3262_v9 }
0x11d1   :  { %v2038_v21 = vpop.permute.xlu1 %2037 }
0x11d2   :  { %v2040_v27 = vmul.f32 %v3207_v20, %v2038_v21  ;;  %v2383_v20 = vld [vmem:[#allocation3 + $0x180] sm:$0xff]  ;;  %v2384_v21 = vld [vmem:[#allocation3 + $0x1b8] sm:$0xff] }
0x11d4   :  { %2042 = vrot.lane.b32.xlu1 %v2040_v27, %s3260_s8  ;;  %v3026_v27 = vpack.c.bf16 %v2384_v21, %v2383_v20 }
0x1236   :  { %v2078_v45 = vpop.permute.xlu0 %2077 }
0x1237   :  { %v2080_v25 = vadd.f32 %v2078_v45, %v2070_v19 }
0x1239   :  { %3208 = vtanh.f32 %v2080_v25 }
0x1243   :  { %v3209_v30 = vpop.eup %3208 }
0x1244   :  { %2083 = vrot.lane.b32.xlu0 %v3209_v30, %s3260_s8 }
0x1246   :  { %v2043_v51 = vpop.permute.xlu1 %2042 }
0x1247   :  { %v2045_v56 = vadd.f32 %v2043_v51, %v2035_v38  ;;  %v2460_v38 = vld [vmem:[%s3807_s3] sm:$0xff]  ;;  %v2461_v51 = vld [vmem:[%s3807_s3 + $0x8] sm:$0xff] }
0x1249   :  { %3210 = vtanh.f32 %v2045_v56 }
0x1253   :  { %v3211_v0 = vpop.eup %3210 }
0x1254   :  { %2048 = vrot.lane.b32.xlu1 %v3211_v0, %s3260_s8  ;;  %v3029_v0 = vpack.c.bf16 %v2461_v51, %v2460_v38 }
0x12b6   :  { %v2084_v6 = vpop.permute.xlu0 %2083 }
0x12b7   :  { %v2086_v26 = vmul.f32 %v3195_v44, %v2084_v6 }
0x12b9   :  { %2609 = vmatmul.mubr.msk.f32.vlgmr.msra.gmra.mrb[12].mxu1 %vm219_vm0, %v2086_v26  ;;  %v2462_v26 = vld [vmem:[%s3807_s3 + $0x10] sm:$0xff] }
0x12ba   :  { %2987 = vmatpush1.bf16.msra.mxu1 %v3489_v31  ;;  %2230 = vmatprep.mubr.f32.mxu1 %v3261_v24 }
0x12bb   :  { %2989 = vmatprep.subr.bf16.mxu1 %v3491_v32 }
0x12be   :  { %2991 = vmatpush1.bf16.msra.mxu1 %v3496_v40 }
0x12bf   :  { %2993 = vmatprep.subr.bf16.mxu1 %v3500_v41 }
0x12c2   :  { %2995 = vmatpush1.bf16.msra.mxu1 %v3506_v49 }
0x12c3   :  { %2997 = vmatprep.subr.bf16.mxu1 %v3509_v52 }
0x12c6   :  { %v2049_v46 = vpop.permute.xlu1 %2048  ;;  %2999 = vmatpush1.bf16.msra.mxu1 %v3514_v57 }
0x12c7   :  { %v2051_v16 = vmul.f32 %v3199_v8, %v2049_v46  ;;  %3001 = vmatprep.subr.bf16.mxu1 %v3481_v22  ;;  %v2463_v46 = vld [vmem:[%s3807_s3 + $0x18] sm:$0xff] }
0x12c9   :  { %2610 = vmatmul.mubr.msk.f32.vlgmr.msra.gmra.mrb[10].mxu1 %vm219_vm0, %v2051_v16  ;;  %v3032_v16 = vpack.c.bf16 %v2463_v46, %v2462_v26 }
0x12ca   :  { %3003 = vmatpush1.bf16.msra.mxu1 %v3489_v31  ;;  %2337 = vmatprep.mubr.f32.mxu1 %v3261_v24 }
0x12cb   :  { %3005 = vmatprep.subr.bf16.mxu1 %v3491_v32 }
0x12ce   :  { %3007 = vmatpush1.bf16.msra.mxu1 %v3496_v40 }
0x12cf   :  { %3009 = vmatprep.subr.bf16.mxu1 %v3500_v41 }
0x12d2   :  { %3011 = vmatpush1.bf16.msra.mxu1 %v3506_v49 }
0x12d3   :  { %3013 = vmatprep.subr.bf16.mxu1 %v3509_v52 }
0x12d6   :  { %3015 = vmatpush1.bf16.msra.mxu1 %v3514_v57 }
0x139c   :  { %v2232_v61 = vpop.f32.mrb[10].mxu1 }
0x139d   :  { %v2234_v22 = vpop.f32.mrb[11].mxu1  ;;  %v3044_v41 = vadd.f32 %v2232_v61, %v3440_v11  ;;  %v2385_v61 = vld [vmem:[%s3805_s1 + $0x3] ss:$0 sm:$0xff] }
0x139e   :  { %v3045_v33 = vadd.f32 %v2234_v22, %v3428_v50 }
0x139f   :  { %v2611_v49 = vmul.f32 -1.442695, %v3044_v41 }
0x13a0   :  { %v2612_v42 = vmul.f32 -1.442695, %v3045_v33 }
0x13a2   :  { %3212 = vpow2.f32 %v2612_v42 }
0x13ac   :  { %v3213_v31 = vpop.eup %3212 }
0x13ad   :  { %v2246_v47 = vadd.f32 1.0, %v3213_v31  ;;  %v2464_v31 = vld [vmem:[%s3805_s1 + $0x4] ss:$0 sm:$0xff] }
0x13af   :  { %3214 = vrcp.f32 %v2246_v47 }
0x13b0   :  { %3216 = vpow2.f32 %v2611_v49 }
0x13b9   :  { %v3215_v32 = vpop.eup %3214 }
0x13ba   :  { %v2251_v55 = vmul.f32 2.0, %v3215_v32  ;;  %v3217_v52 = vpop.eup %3216 }
0x13bb   :  { %v2245_v57 = vadd.f32 1.0, %v3217_v52 }
0x13bc   :  { %v2613_v40 = vadd.f32 -1.0, %v2251_v55 }
0x13bd   :  { %3218 = vrcp.f32 %v2245_v57 }
0x13be   :  { %2255 = vrot.lane.b32.xlu0 %v2613_v40, %s3260_s8 }
0x13c7   :  { %v3219_v60 = vpop.eup %3218 }
0x13c8   :  { %v2253_v36 = vmul.f32 %v3219_v60, %v2045_v56 }
0x1430   :  { %v2256_v35 = vpop.permute.xlu0 %2255 }
0x1431   :  { %v2258_v34 = vmul.f32 %v3219_v60, %v2256_v35 }
0x1433   :  { %2260 = vrot.lane.b32.xlu1 %v2258_v34, %s3260_s8 }
0x14a5   :  { %v2261_v5 = vpop.permute.xlu1 %2260 }
0x14a6   :  { %v2263_v29 = vadd.f32 %v2261_v5, %v2253_v36 }
0x14a8   :  { %3220 = vtanh.f32 %v2263_v29 }
0x14b2   :  { %v3221_v12 = vpop.eup %3220 }
0x14b3   :  { %2266 = vrot.lane.b32.xlu0 %v3221_v12, %s3260_s8 }
0x1525   :  { %v2267_v39 = vpop.permute.xlu0 %2266 }
0x1526   :  { %v2269_v23 = vmul.f32 %v3215_v32, %v2267_v39 }
0x1528   :  { %2614 = vmatmul.mubr.msk.f32.vlgmr.msra.gmra.mrb[12].mxu1 %vm219_vm0, %v2269_v23 }
0x15fb   :  { %v2339_v43 = vpop.f32.mrb[12].mxu1 }
0x15fc   :  { %v2341_v17 = vpop.f32.mrb[13].mxu1  ;;  %v3046_v58 = vadd.f32 %v2339_v43, %v3440_v11  ;;  %v2381_v11 = vld [vmem:[#allocation3 + $0x110] sm:$0xff] }
0x15fd   :  { %v3047_v37 = vadd.f32 %v2341_v17, %v3428_v50  ;;  %v3023_v18 = vpack.c.bf16 %v2382_v28, %v2381_v11 }
0x15fe   :  { %v2615_v10 = vmul.f32 -1.442695, %v3046_v58 }
0x15ff   :  { %v2616_v44 = vmul.f32 -1.442695, %v3047_v37  ;;  %3024 = vmatpush3.bf16.msra.mxu0 %v3023_v18 }
0x1600   :  { %3025 = vmatprep.subr.bf16.mxu0 %v3262_v9 }
0x1601   :  { %3222 = vpow2.f32 %v2616_v44 }
0x1603   :  { %3027 = vmatpush3.bf16.msra.mxu0 %v3026_v27 }
0x1604   :  { %3028 = vmatprep.subr.bf16.mxu0 %v3262_v9 }
0x160b   :  { %v3223_v48 = vpop.eup %3222 }
0x160c   :  { %v2353_v53 = vadd.f32 1.0, %v3223_v48 }
0x160e   :  { %3224 = vrcp.f32 %v2353_v53 }
0x160f   :  { %3226 = vpow2.f32 %v2615_v10 }
0x1618   :  { %v3225_v7 = vpop.eup %3224 }
0x1619   :  { %v2358_v54 = vmul.f32 2.0, %v3225_v7  ;;  %v3227_v62 = vpop.eup %3226 }
0x161a   :  { %v2352_v1 = vadd.f32 1.0, %v3227_v62 }
0x161b   :  { %v2617_v8 = vadd.f32 -1.0, %v2358_v54 }
0x161c   :  { %3228 = vrcp.f32 %v2352_v1 }
0x161d   :  { %2362 = vrot.lane.b32.xlu1 %v2617_v8, %s3260_s8 }
0x1626   :  { %v3229_v15 = vpop.eup %3228 }
0x1627   :  { %v2360_v19 = vmul.f32 %v3229_v15, %v2263_v29 }
0x168f   :  { %v2363_v59 = vpop.permute.xlu1 %2362 }
0x1690   :  { %v2365_v50 = vmul.f32 %v3229_v15, %v2363_v59 }
0x1692   :  { %2367 = vrot.lane.b32.xlu0 %v2365_v50, %s3260_s8 }
0x1704   :  { %v2368_v45 = vpop.permute.xlu0 %2367 }
0x1705   :  { %v2370_v25 = vadd.f32 %v2368_v45, %v2360_v19 }
0x1707   :  { %3230 = vtanh.f32 %v2370_v25 }
0x1711   :  { %v3231_v30 = vpop.eup %3230 }
0x1712   :  { %2373 = vrot.lane.b32.xlu1 %v3231_v30, %s3260_s8 }
0x1784   :  { %v2374_v56 = vpop.permute.xlu1 %2373 }
0x1785   :  { %v2376_v6 = vmul.f32 %v3225_v7, %v2374_v56 }
0x1787   :  { %2651 = vmatmul.mubr.msk.f32.vlgmr.msra.gmra.mrb[16].mxu0 %vm219_vm0, %v2376_v6 }
0x1788   :  { %3030 = vmatpush3.bf16.msra.mxu0 %v3029_v0  ;;  %2661 = vmatprep.mubr.msk.f32.mxu0 %vm3263_vm1, %v3261_v24 }
0x1789   :  { %3031 = vmatprep.subr.bf16.mxu0 %v3262_v9 }
0x178c   :  { %3033 = vmatpush3.bf16.msra.mxu0 %v3032_v16 }
0x185a   :  { %v2455_v22 = vpop.f32.mrb[16].mxu0 }
0x185b   :  { %v2456_v33 = vadd.f32 %v2455_v22, %v2385_v61  ;;  %v2652_v42 = vpop.f32.mrb[17].mxu0 }
0x185d   :  { %v2459_v24 = vmax.f32 %v2456_v33, 0.0 }
0x185f   :  { %2662 = vmatmul.mubr.msk.f32.vlgmr.msra.gmra.mrb[18].mxu0 %vm2465_vm2, %v2459_v24 }
0x1932   :  { %v2535_v47 = vpop.f32.mrb[18].mxu0 }
0x1933   :  { %v2536_v32 = vadd.f32 %v2535_v47, %v2464_v31  ;;  %v2663_v55 = vpop.f32.mrb[19].mxu0 }
0x1935   :  { %2540 = vst.msk [vmem:[%s3808_s4] sm:$0xff] %vm2539_vm3, %v2536_v32 }
0x1936   :  { %2545 = vsyncpa [#allocation4], 1 }

</bundles_post_ra>
